<compile_context>
chip_gen: v6e
topology: v6e:2x2x1
jax: 0.10.0
libtpu: 0.0.40
codegen_flags: <defaults>
</compile_context>

<pallas_src>
import functools

import jax
import jax.numpy as jnp
import numpy as np
from jax import lax
from jax.experimental import pallas as pl
from jax.experimental.pallas import tpu as pltpu


def _pick_tile(dim, target, align):
    """Largest block size <= target that divides `dim` and is `align`-aligned,
    or the full dim when dim <= target (full-extent blocks are always legal)."""
    if dim <= target:
        return dim
    cap = (min(target, dim) // align) * align
    for cand in range(cap, 0, -align):
        if dim % cand == 0:
            return cand
    # TODO(synk): no aligned divisor — fall back to the full dim (a masked last
    # tile via pl.cdiv would be better for very large prime-ish dims).
    return dim


# ----------------------------------------------------------------------------
# Kernel 1: tiled matmul + bias (+ optional ReLU).  bf16 MXU inputs, f32 acc.
# ----------------------------------------------------------------------------
def _matmul_bias_kernel(x_ref, w_ref, b_ref, o_ref, acc_ref, *, activation):
    @pl.when(pl.program_id(2) == 0)
    def _init():
        acc_ref[...] = jnp.zeros_like(acc_ref)

    acc_ref[...] += jnp.dot(x_ref[...], w_ref[...],
                            preferred_element_type=jnp.float32)

    @pl.when(pl.program_id(2) == pl.num_programs(2) - 1)
    def _finalize():
        y = acc_ref[...] + b_ref[...]
        if activation == "relu":
            y = jnp.maximum(y, 0.0)
        o_ref[...] = y.astype(o_ref.dtype)


def linear(x, w, b, activation=None, out_dtype=jnp.bfloat16,
           tm=512, tn=512, tk=512):
    M, K = x.shape
    _, N = w.shape
    tm = _pick_tile(M, tm, 8)
    tn = _pick_tile(N, tn, 128)
    tk = _pick_tile(K, tk, 128)
    grid = (M // tm, N // tn, K // tk)
    kernel = functools.partial(_matmul_bias_kernel, activation=activation)
    cost = pl.CostEstimate(
        flops=2 * M * N * K,
        transcendentals=0,
        bytes_accessed=M * K * x.dtype.itemsize + K * N * w.dtype.itemsize
        + N * 4 + M * N * jnp.dtype(out_dtype).itemsize)
    return pl.pallas_call(
        kernel,
        out_shape=jax.ShapeDtypeStruct((M, N), out_dtype),
        grid_spec=pltpu.PrefetchScalarGridSpec(
            num_scalar_prefetch=0,
            grid=grid,
            in_specs=[
                pl.BlockSpec((tm, tk), lambda i, j, k: (i, k)),
                pl.BlockSpec((tk, tn), lambda i, j, k: (k, j)),
                pl.BlockSpec((1, tn), lambda i, j, k: (0, j)),
            ],
            out_specs=pl.BlockSpec((tm, tn), lambda i, j, k: (i, j)),
            scratch_shapes=[pltpu.VMEM((tm, tn), jnp.float32)],
        ),
        compiler_params=pltpu.CompilerParams(
            dimension_semantics=("parallel", "parallel", "arbitrary")),
        cost_estimate=cost,
    )(x, w, b)


# ----------------------------------------------------------------------------
# Kernel 2: matmul + bias with residual-add + LayerNorm fused into the epilogue
# (requires the full output width N resident, i.e. tn == N).
# ----------------------------------------------------------------------------
def _matmul_res_ln_kernel(x_ref, w_ref, b_ref, res_ref, g_ref, bt_ref,
                          o_ref, acc_ref, *, eps):
    @pl.when(pl.program_id(1) == 0)
    def _init():
        acc_ref[...] = jnp.zeros_like(acc_ref)

    acc_ref[...] += jnp.dot(x_ref[...], w_ref[...],
                            preferred_element_type=jnp.float32)

    @pl.when(pl.program_id(1) == pl.num_programs(1) - 1)
    def _finalize():
        z = acc_ref[...] + b_ref[...] + res_ref[...].astype(jnp.float32)
        mu = jnp.mean(z, axis=-1, keepdims=True)
        zc = z - mu
        var = jnp.mean(zc * zc, axis=-1, keepdims=True)
        inv = lax.rsqrt(var + eps)
        o_ref[...] = (zc * inv * g_ref[...] + bt_ref[...]).astype(o_ref.dtype)


def linear_residual_layernorm(x, w, b, res, gamma, beta, eps=1e-5,
                              out_dtype=jnp.bfloat16, tm=512, tk=512):
    M, K = x.shape
    _, N = w.shape
    tm = _pick_tile(M, tm, 8)
    tk = _pick_tile(K, tk, 128)
    grid = (M // tm, K // tk)
    kernel = functools.partial(_matmul_res_ln_kernel, eps=eps)
    cost = pl.CostEstimate(
        flops=2 * M * N * K + 8 * M * N,
        transcendentals=M,
        bytes_accessed=(M * K + K * N + 2 * M * N) * 2 + 3 * N * 4)
    return pl.pallas_call(
        kernel,
        out_shape=jax.ShapeDtypeStruct((M, N), out_dtype),
        grid_spec=pltpu.PrefetchScalarGridSpec(
            num_scalar_prefetch=0,
            grid=grid,
            in_specs=[
                pl.BlockSpec((tm, tk), lambda i, k: (i, k)),
                pl.BlockSpec((tk, N), lambda i, k: (k, 0)),
                pl.BlockSpec((1, N), lambda i, k: (0, 0)),
                pl.BlockSpec((tm, N), lambda i, k: (i, 0)),
                pl.BlockSpec((1, N), lambda i, k: (0, 0)),
                pl.BlockSpec((1, N), lambda i, k: (0, 0)),
            ],
            out_specs=pl.BlockSpec((tm, N), lambda i, k: (i, 0)),
            scratch_shapes=[pltpu.VMEM((tm, N), jnp.float32)],
        ),
        compiler_params=pltpu.CompilerParams(
            dimension_semantics=("parallel", "arbitrary")),
        cost_estimate=cost,
    )(x, w, b, res, gamma, beta)


# ----------------------------------------------------------------------------
# Kernel 3: fused FFN (lin1 -> ReLU -> lin2 -> +residual -> LayerNorm) per
# M tile; the (tm, ff_dim) ReLU intermediate never touches HBM.
# ----------------------------------------------------------------------------
def _ffn_res_ln_kernel(x_ref, w1_ref, b1_ref, w2_ref, b2_ref, res_ref,
                       g_ref, bt_ref, o_ref, *, eps):
    h = jnp.dot(x_ref[...], w1_ref[...], preferred_element_type=jnp.float32)
    h = jnp.maximum(h + b1_ref[...], 0.0).astype(jnp.bfloat16)
    y = jnp.dot(h, w2_ref[...], preferred_element_type=jnp.float32) + b2_ref[...]
    z = y + res_ref[...].astype(jnp.float32)
    mu = jnp.mean(z, axis=-1, keepdims=True)
    zc = z - mu
    var = jnp.mean(zc * zc, axis=-1, keepdims=True)
    inv = lax.rsqrt(var + eps)
    o_ref[...] = (zc * inv * g_ref[...] + bt_ref[...]).astype(o_ref.dtype)


def ffn_residual_layernorm(x, w1, b1, w2, b2, res, gamma, beta, eps=1e-5,
                           out_dtype=jnp.bfloat16, tm=256):
    M, K = x.shape
    F = w1.shape[1]
    N = w2.shape[1]
    tm = _pick_tile(M, tm, 8)
    # Rough VMEM budget check: full-width weights + f32 intermediate per tile.
    vmem_bytes = 2 * (tm * K + K * F + F * N + 2 * tm * N) * 2 + tm * (F + N) * 4
    if vmem_bytes > 24 * 1024 * 1024:
        # TODO(synk): tile the ff dimension inside the kernel instead of
        # falling back to two passes for very large ff_dim / hidden_dim.
        ff = linear(x, w1, b1, activation="relu")
        return linear_residual_layernorm(ff, w2, b2, res, gamma, beta, eps,
                                         out_dtype=out_dtype)
    kernel = functools.partial(_ffn_res_ln_kernel, eps=eps)
    cost = pl.CostEstimate(
        flops=2 * M * F * (K + N) + 8 * M * N,
        transcendentals=M,
        bytes_accessed=(M * K + K * F + F * N + 2 * M * N) * 2)
    return pl.pallas_call(
        kernel,
        out_shape=jax.ShapeDtypeStruct((M, N), out_dtype),
        grid_spec=pltpu.PrefetchScalarGridSpec(
            num_scalar_prefetch=0,
            grid=(M // tm,),
            in_specs=[
                pl.BlockSpec((tm, K), lambda i: (i, 0)),
                pl.BlockSpec((K, F), lambda i: (0, 0)),
                pl.BlockSpec((1, F), lambda i: (0, 0)),
                pl.BlockSpec((F, N), lambda i: (0, 0)),
                pl.BlockSpec((1, N), lambda i: (0, 0)),
                pl.BlockSpec((tm, N), lambda i: (i, 0)),
                pl.BlockSpec((1, N), lambda i: (0, 0)),
                pl.BlockSpec((1, N), lambda i: (0, 0)),
            ],
            out_specs=pl.BlockSpec((tm, N), lambda i: (i, 0)),
        ),
        compiler_params=pltpu.CompilerParams(
            dimension_semantics=("parallel",)),
        cost_estimate=cost,
    )(x, w1, b1, w2, b2, res, gamma, beta)


# ----------------------------------------------------------------------------
# Kernel 4: multi-head self-attention.  One grid step per batch element; the
# kernel consumes the full (T, 3H) QKV slab (q columns pre-scaled by 1/sqrt(dh))
# and writes a lane-dense (T, H) output slab with all heads concatenated.
# ----------------------------------------------------------------------------
def _mha_kernel(qkv_ref, o_ref, *, num_heads, head_dim):
    H = num_heads * head_dim
    qkv = qkv_ref[0]                                           # (T, 3H) bf16
    outs = []
    for h in range(num_heads):
        lo = h * head_dim
        q = qkv[:, lo:lo + head_dim]                           # (T, dh), pre-scaled
        k = qkv[:, H + lo:H + lo + head_dim]
        v = qkv[:, 2 * H + lo:2 * H + lo + head_dim]
        s = lax.dot_general(q, k, (((1,), (1,)), ((), ())),
                            preferred_element_type=jnp.float32)  # (T, T)
        m = jnp.max(s, axis=-1, keepdims=True)
        e = jnp.exp(s - m)
        inv_denom = pl.reciprocal(jnp.sum(e, axis=-1, keepdims=True), approx=True)
        p = (e * inv_denom).astype(jnp.bfloat16)
        outs.append(jnp.dot(p, v, preferred_element_type=jnp.float32))
    o_ref[0] = jnp.concatenate(outs, axis=-1).astype(o_ref.dtype)


def multi_head_attention(qkv, num_heads):
    # qkv: (B, T, 3H) bf16, Q columns already scaled by 1/sqrt(dh).
    B, T, H3 = qkv.shape
    H = H3 // 3
    dh = H // num_heads
    kernel = functools.partial(_mha_kernel, num_heads=num_heads, head_dim=dh)
    cost = pl.CostEstimate(
        flops=4 * B * num_heads * T * T * dh,
        transcendentals=B * num_heads * T * T,
        bytes_accessed=(B * T * H3 + B * T * H) * 2)
    return pl.pallas_call(
        kernel,
        out_shape=jax.ShapeDtypeStruct((B, T, H), jnp.bfloat16),
        grid_spec=pltpu.PrefetchScalarGridSpec(
            num_scalar_prefetch=0,
            grid=(B,),
            in_specs=[pl.BlockSpec((1, T, H3), lambda b: (b, 0, 0))],
            out_specs=pl.BlockSpec((1, T, H), lambda b: (b, 0, 0)),
        ),
        compiler_params=pltpu.CompilerParams(dimension_semantics=("parallel",)),
        cost_estimate=cost,
    )(qkv)


# ----------------------------------------------------------------------------
# Kernel 5: mean over the time axis.  Parallel batch axis + arbitrary time axis,
# f32 accumulation directly in the resident output block.
# ----------------------------------------------------------------------------
def _mean_time_kernel(x_ref, o_ref, *, inv_t):
    @pl.when(pl.program_id(1) == 0)
    def _init():
        o_ref[...] = jnp.zeros_like(o_ref)

    o_ref[...] += jnp.sum(x_ref[...].astype(jnp.float32), axis=1) * inv_t


def mean_over_time(x_bth, tile_t=512, tile_b=8):
    B, T, H = x_bth.shape
    tt = _pick_tile(T, tile_t, 8)
    tb = _pick_tile(B, tile_b, 8)
    kernel = functools.partial(_mean_time_kernel, inv_t=1.0 / T)
    return pl.pallas_call(
        kernel,
        out_shape=jax.ShapeDtypeStruct((B, H), jnp.float32),
        grid_spec=pltpu.PrefetchScalarGridSpec(
            num_scalar_prefetch=0,
            grid=(B // tb, T // tt),
            in_specs=[pl.BlockSpec((tb, tt, H), lambda b, t: (b, t, 0))],
            out_specs=pl.BlockSpec((tb, H), lambda b, t: (b, 0)),
        ),
        compiler_params=pltpu.CompilerParams(
            dimension_semantics=("parallel", "arbitrary")),
    )(x_bth)


# ----------------------------------------------------------------------------
# Model wrapper (layout glue only; all math lives inside the Pallas kernels)
# ----------------------------------------------------------------------------
def encoder_layer_forward(h2d, p, num_heads, B, T):
    H = h2d.shape[1]
    # QKV projection (1/sqrt(dh) already folded into the Q columns of w/b).
    qkv = linear(h2d, p["w_qkv"], p["b_qkv"])                  # (B*T, 3H) bf16
    attn = multi_head_attention(qkv.reshape(B, T, 3 * H), num_heads)  # (B,T,H)
    # Output projection + residual + LayerNorm fused (post-norm).
    h2d = linear_residual_layernorm(attn.reshape(B * T, H), p["w_o"], p["b_o"],
                                    h2d, p["ln1_g"], p["ln1_b"])
    # FFN (lin1 -> ReLU -> lin2) + residual + LayerNorm fused (post-norm).
    h2d = ffn_residual_layernorm(h2d, p["w_ff1"], p["b_ff1"],
                                 p["w_ff2"], p["b_ff2"], h2d,
                                 p["ln2_g"], p["ln2_b"])
    return h2d


def transformer_forward(x, params, *, num_heads):
    B, T, D = x.shape
    H = params["emb_w"].shape[1]
    dh = H // num_heads
    scale = 1.0 / float(np.sqrt(dh))

    def bf16(a):
        return a.astype(jnp.bfloat16)

    # Embedding + ReLU (bf16 activations downstream).
    h2d = linear(bf16(x).reshape(B * T, D), bf16(params["emb_w"]),
                 params["emb_b"], activation="relu")           # (B*T, H) bf16

    # Fold the attention scale into the Q section of the QKV projection once.
    qsec = jnp.concatenate([jnp.full((1, H), scale, jnp.float32),
                            jnp.ones((1, 2 * H), jnp.float32)], axis=1)
    for p in params["layers"]:
        lp = {
            "w_qkv": bf16(p["w_qkv"] * qsec), "b_qkv": p["b_qkv"] * qsec,
            "w_o": bf16(p["w_o"]), "b_o": p["b_o"],
            "ln1_g": p["ln1_g"], "ln1_b": p["ln1_b"],
            "w_ff1": bf16(p["w_ff1"]), "b_ff1": p["b_ff1"],
            "w_ff2": bf16(p["w_ff2"]), "b_ff2": p["b_ff2"],
            "ln2_g": p["ln2_g"], "ln2_b": p["ln2_b"],
        }
        h2d = encoder_layer_forward(h2d, lp, num_heads, B, T)
    return mean_over_time(h2d.reshape(B, T, H))                # (B, H) f32


def init_params(key, input_dim, hidden_dim, num_layers):
    def nrm(k, shape):
        return 0.1 * jax.random.normal(k, shape, jnp.float32)

    keys = jax.random.split(key, 1 + num_layers)
    ke = jax.random.split(keys[0], 2)
    params = {
        "emb_w": nrm(ke[0], (input_dim, hidden_dim)),
        "emb_b": nrm(ke[1], (1, hidden_dim)),
        "layers": [],
    }
    ff_dim = hidden_dim  # dim_feedforward = hidden_dim in the module
    for l in range(num_layers):
        kl = jax.random.split(keys[1 + l], 12)
        params["layers"].append({
            "w_qkv": nrm(kl[0], (hidden_dim, 3 * hidden_dim)),
            "b_qkv": nrm(kl[1], (1, 3 * hidden_dim)),
            "w_o":   nrm(kl[2], (hidden_dim, hidden_dim)),
            "b_o":   nrm(kl[3], (1, hidden_dim)),
            "ln1_g": 1.0 + nrm(kl[4], (1, hidden_dim)),
            "ln1_b": nrm(kl[5], (1, hidden_dim)),
            "w_ff1": nrm(kl[6], (hidden_dim, ff_dim)),
            "b_ff1": nrm(kl[7], (1, ff_dim)),
            "w_ff2": nrm(kl[8], (ff_dim, hidden_dim)),
            "b_ff2": nrm(kl[9], (1, hidden_dim)),
            "ln2_g": 1.0 + nrm(kl[10], (1, hidden_dim)),
            "ln2_b": nrm(kl[11], (1, hidden_dim)),
        })
    return params


# ----------------------------------------------------------------------------
# Pure-JAX f32 reference (mirrors the PyTorch forward, eval mode)
# ----------------------------------------------------------------------------
def _layernorm_ref(z, g, b, eps):
    mu = jnp.mean(z, axis=-1, keepdims=True)
    zc = z - mu
    var = jnp.mean(zc * zc, axis=-1, keepdims=True)
    return zc * lax.rsqrt(var + eps) * g + b


def reference_forward(x, params, num_heads, eps=1e-5):
    hp = lax.Precision.HIGHEST
    B, T, D = x.shape
    H = params["emb_w"].shape[1]
    dh = H // num_heads
    scale = 1.0 / float(np.sqrt(dh))
    h = jax.nn.relu(jnp.einsum("btd,dh->bth", x, params["emb_w"], precision=hp)
                    + params["emb_b"][0])
    for p in params["layers"]:
        qkv = jnp.einsum("bth,hk->btk", h, p["w_qkv"], precision=hp) + p["b_qkv"][0]
        q, k, v = jnp.split(qkv, 3, axis=-1)

        def heads(t):
            return t.reshape(B, T, num_heads, dh).transpose(0, 2, 1, 3)

        q, k, v = heads(q) * scale, heads(k), heads(v)
        s = jnp.einsum("bhqd,bhkd->bhqk", q, k, precision=hp)
        s = s - jnp.max(s, axis=-1, keepdims=True)
        e = jnp.exp(s)
        a = e / jnp.sum(e, axis=-1, keepdims=True)
        o = jnp.einsum("bhqk,bhkd->bhqd", a, v, precision=hp)
        o = o.transpose(0, 2, 1, 3).reshape(B, T, H)
        o = jnp.einsum("bth,hk->btk", o, p["w_o"], precision=hp) + p["b_o"][0]
        h = _layernorm_ref(h + o, p["ln1_g"][0], p["ln1_b"][0], eps)
        ff = jax.nn.relu(jnp.einsum("bth,hf->btf", h, p["w_ff1"], precision=hp)
                         + p["b_ff1"][0])
        ff = jnp.einsum("btf,fh->bth", ff, p["w_ff2"], precision=hp) + p["b_ff2"][0]
        h = _layernorm_ref(h + ff, p["ln2_g"][0], p["ln2_b"][0], eps)
    return jnp.mean(h, axis=1)


if __name__ == "__main__":
    B, T, INPUT_DIM, HIDDEN_DIM = 2, 8, 16, 32
    NUM_LAYERS, NUM_HEADS, NUM_CLASSES = 2, 4, 8   # num_classes unused in forward

    key = jax.random.PRNGKey(0)
    kx, kp = jax.random.split(key)
    x = jax.random.normal(kx, (B, T, INPUT_DIM), jnp.float32)
    params = init_params(kp, INPUT_DIM, HIDDEN_DIM, NUM_LAYERS)

    fwd = jax.jit(functools.partial(transformer_forward, num_heads=NUM_HEADS))
    y = jax.block_until_ready(fwd(x, params))

    # bf16 MXU path vs f32 HIGHEST-precision reference: relaxed tolerance.
    y_ref = reference_forward(x, params, NUM_HEADS)
    np.testing.assert_allclose(np.asarray(y, np.float32), np.asarray(y_ref),
                               atol=5e-2, rtol=5e-2)
    assert y.shape == (B, HIDDEN_DIM)
    print("KERNEL_OK")
</pallas_src>

<mosaic_0001>
module attributes {stable_mosaic.version = 11 : i64} {
  func.func @_matmul_bias_kernel(%arg0: i32, %arg1: i32, %arg2: i32, %arg3: memref<16x16xbf16, #tpu.memory_space<vmem>>, %arg4: memref<16x32xbf16, #tpu.memory_space<vmem>>, %arg5: memref<1x32xf32, #tpu.memory_space<vmem>>, %arg6: memref<16x32xbf16, #tpu.memory_space<vmem>>, %arg7: memref<16x32xf32, #tpu.memory_space<vmem>>) attributes {dimension_semantics = [#tpu.dimension_semantics<parallel>, #tpu.dimension_semantics<parallel>, #tpu.dimension_semantics<arbitrary>], iteration_bounds = array<i64: 1, 1, 1>, scalar_prefetch = 0 : i64, scratch_operands = 1 : i64, tpu.core_type = #tpu.core_type<tc>, window_params = [{transform_indices = @transform_0, window_bounds = array<i64: 16, 16>}, {transform_indices = @transform_1, window_bounds = array<i64: 16, 32>}, {transform_indices = @transform_2, window_bounds = array<i64: 1, 32>}, {transform_indices = @transform_3, window_bounds = array<i64: 16, 32>}]} {
    %c0_i32 = arith.constant 0 : i32
    %0 = arith.cmpi eq, %arg2, %c0_i32 : i32
    %1 = arith.extui %0 : i1 to i32
    %c0_i32_0 = arith.constant 0 : i32
    %2 = arith.cmpi ne, %1, %c0_i32_0 : i32
    scf.if %2 {
      %cst_10 = arith.constant 0.000000e+00 : f32
      %12 = vector.broadcast %cst_10 : f32 to vector<16x32xf32>
      %c0_11 = arith.constant 0 : index
      %c0_12 = arith.constant 0 : index
      %13 = vector.load %arg7[%c0_11, %c0_12] : memref<16x32xf32, #tpu.memory_space<vmem>>, vector<16x32xf32>
      tpu.vector_store %arg7[%c0_11, %c0_12], %12 {strides = array<i32>} : memref<16x32xf32, #tpu.memory_space<vmem>>, vector<16x32xf32>,
    } else {
    }
    %c0 = arith.constant 0 : index
    %c0_1 = arith.constant 0 : index
    %3 = vector.load %arg7[%c0, %c0_1] : memref<16x32xf32, #tpu.memory_space<vmem>>, vector<16x32xf32>
    %c0_2 = arith.constant 0 : index
    %c0_3 = arith.constant 0 : index
    %4 = vector.load %arg3[%c0_2, %c0_3] : memref<16x16xbf16, #tpu.memory_space<vmem>>, vector<16x16xbf16>
    %c0_4 = arith.constant 0 : index
    %c0_5 = arith.constant 0 : index
    %5 = vector.load %arg4[%c0_4, %c0_5] : memref<16x32xbf16, #tpu.memory_space<vmem>>, vector<16x32xbf16>
    %cst = arith.constant dense<0.000000e+00> : vector<16x32xf32>
    %6 = tpu.matmul %4, %5, %cst {dimension_numbers = #tpu.dot_dimension_numbers<[1], [0], [0], [1], [0, 0, 1, 1], [], []>} : vector<16x16xbf16>, vector<16x32xbf16>, vector<16x32xf32> -> vector<16x32xf32>
    %7 = arith.addf %3, %6 : vector<16x32xf32>
    %c0_6 = arith.constant 0 : index
    %c0_7 = arith.constant 0 : index
    %8 = vector.load %arg7[%c0_6, %c0_7] : memref<16x32xf32, #tpu.memory_space<vmem>>, vector<16x32xf32>
    tpu.vector_store %arg7[%c0_6, %c0_7], %7 {strides = array<i32>} : memref<16x32xf32, #tpu.memory_space<vmem>>, vector<16x32xf32>,
    %c0_i32_8 = arith.constant 0 : i32
    %9 = arith.cmpi eq, %arg2, %c0_i32_8 : i32
    %10 = arith.extui %9 : i1 to i32
    %c0_i32_9 = arith.constant 0 : i32
    %11 = arith.cmpi ne, %10, %c0_i32_9 : i32
    scf.if %11 {
      %c0_10 = arith.constant 0 : index
      %c0_11 = arith.constant 0 : index
      %12 = vector.load %arg7[%c0_10, %c0_11] : memref<16x32xf32, #tpu.memory_space<vmem>>, vector<16x32xf32>
      %c0_12 = arith.constant 0 : index
      %c0_13 = arith.constant 0 : index
      %13 = vector.load %arg5[%c0_12, %c0_13] : memref<1x32xf32, #tpu.memory_space<vmem>>, vector<1x32xf32>
      %14 = vector.broadcast %13 : vector<1x32xf32> to vector<16x32xf32>
      %15 = arith.addf %12, %14 : vector<16x32xf32>
      %cst_14 = arith.constant 0.000000e+00 : f32
      %16 = vector.broadcast %cst_14 : f32 to vector<16x32xf32>
      %17 = arith.maximumf %15, %16 : vector<16x32xf32>
      %18 = arith.truncf %17 : vector<16x32xf32> to vector<16x32xbf16>
      %c0_15 = arith.constant 0 : index
      %c0_16 = arith.constant 0 : index
      %19 = vector.load %arg6[%c0_15, %c0_16] : memref<16x32xbf16, #tpu.memory_space<vmem>>, vector<16x32xbf16>
      tpu.vector_store %arg6[%c0_15, %c0_16], %18 {strides = array<i32>} : memref<16x32xbf16, #tpu.memory_space<vmem>>, vector<16x32xbf16>,
    } else {
    }
    return
  }
  func.func @transform_0(%arg0: i32, %arg1: i32, %arg2: i32) -> (i32, i32) {
    %c0_i32 = arith.constant 0 : i32
    return %arg0, %arg2 : i32, i32
  }
  func.func @transform_1(%arg0: i32, %arg1: i32, %arg2: i32) -> (i32, i32) {
    %c0_i32 = arith.constant 0 : i32
    return %arg2, %arg1 : i32, i32
  }
  func.func @transform_2(%arg0: i32, %arg1: i32, %arg2: i32) -> (i32, i32) {
    %c0_i32 = arith.constant 0 : i32
    %c0_i32_0 = arith.constant 0 : i32
    return %c0_i32, %arg1 : i32, i32
  }
  func.func @transform_3(%arg0: i32, %arg1: i32, %arg2: i32) -> (i32, i32) {
    %c0_i32 = arith.constant 0 : i32
    return %arg0, %arg1 : i32, i32
  }
}

module attributes {stable_mosaic.version = 11 : i64} {
  func.func @_mha_kernel(%arg0: i32, %arg1: memref<1x8x96xbf16, #tpu.memory_space<vmem>>, %arg2: memref<1x8x32xbf16, #tpu.memory_space<vmem>>) attributes {dimension_semantics = [#tpu.dimension_semantics<parallel>], iteration_bounds = array<i64: 2>, scalar_prefetch = 0 : i64, scratch_operands = 0 : i64, tpu.core_type = #tpu.core_type<tc>, window_params = [{transform_indices = @transform_0, window_bounds = array<i64: 1, 8, 96>}, {transform_indices = @transform_1, window_bounds = array<i64: 1, 8, 32>}]} {
    %c0 = arith.constant 0 : index
    %c0_0 = arith.constant 0 : index
    %c0_1 = arith.constant 0 : index
    %0 = vector.load %arg1[%c0, %c0_0, %c0_1] : memref<1x8x96xbf16, #tpu.memory_space<vmem>>, vector<1x8x96xbf16>
    %1 = vector.shape_cast %0 : vector<1x8x96xbf16> to vector<8x96xbf16>
    %2 = vector.extract_strided_slice %1 {offsets = [0, 0], sizes = [8, 8], strides = [1, 1]} : vector<8x96xbf16> to vector<8x8xbf16>
    %3 = vector.extract_strided_slice %1 {offsets = [0, 32], sizes = [8, 8], strides = [1, 1]} : vector<8x96xbf16> to vector<8x8xbf16>
    %4 = vector.extract_strided_slice %1 {offsets = [0, 64], sizes = [8, 8], strides = [1, 1]} : vector<8x96xbf16> to vector<8x8xbf16>
    %cst = arith.constant dense<0.000000e+00> : vector<8x8xf32>
    %5 = tpu.matmul %2, %3, %cst {dimension_numbers = #tpu.dot_dimension_numbers<[1], [1], [0], [0], [0, 0, 1, 0], [], []>} : vector<8x8xbf16>, vector<8x8xbf16>, vector<8x8xf32> -> vector<8x8xf32>
    %cst_2 = arith.constant dense<0xFF800000> : vector<8xf32>
    %6 = vector.multi_reduction <maximumf>, %5, %cst_2 [1] : vector<8x8xf32> to vector<8xf32>
    %7 = vector.shape_cast %6 : vector<8xf32> to vector<8x1xf32>
    %8 = vector.broadcast %7 : vector<8x1xf32> to vector<8x8xf32>
    %9 = arith.subf %5, %8 : vector<8x8xf32>
    %10 = math.exp %9 : vector<8x8xf32>
    %cst_3 = arith.constant dense<0.000000e+00> : vector<8xf32>
    %11 = vector.multi_reduction <add>, %10, %cst_3 [1] : vector<8x8xf32> to vector<8xf32>
    %12 = vector.shape_cast %11 : vector<8xf32> to vector<8x1xf32>
    %13 = tpu.reciprocal %12 {approx = true} : vector<8x1xf32> -> vector<8x1xf32>
    %14 = vector.broadcast %13 : vector<8x1xf32> to vector<8x8xf32>
    %15 = arith.mulf %10, %14 : vector<8x8xf32>
    %16 = arith.truncf %15 : vector<8x8xf32> to vector<8x8xbf16>
    %cst_4 = arith.constant dense<0.000000e+00> : vector<8x8xf32>
    %17 = tpu.matmul %16, %4, %cst_4 {dimension_numbers = #tpu.dot_dimension_numbers<[1], [0], [0], [1], [0, 0, 1, 1], [], []>} : vector<8x8xbf16>, vector<8x8xbf16>, vector<8x8xf32> -> vector<8x8xf32>
    %18 = vector.extract_strided_slice %1 {offsets = [0, 8], sizes = [8, 8], strides = [1, 1]} : vector<8x96xbf16> to vector<8x8xbf16>
    %19 = vector.extract_strided_slice %1 {offsets = [0, 40], sizes = [8, 8], strides = [1, 1]} : vector<8x96xbf16> to vector<8x8xbf16>
    %20 = vector.extract_strided_slice %1 {offsets = [0, 72], sizes = [8, 8], strides = [1, 1]} : vector<8x96xbf16> to vector<8x8xbf16>
    %cst_5 = arith.constant dense<0.000000e+00> : vector<8x8xf32>
    %21 = tpu.matmul %18, %19, %cst_5 {dimension_numbers = #tpu.dot_dimension_numbers<[1], [1], [0], [0], [0, 0, 1, 0], [], []>} : vector<8x8xbf16>, vector<8x8xbf16>, vector<8x8xf32> -> vector<8x8xf32>
    %cst_6 = arith.constant dense<0xFF800000> : vector<8xf32>
    %22 = vector.multi_reduction <maximumf>, %21, %cst_6 [1] : vector<8x8xf32> to vector<8xf32>
    %23 = vector.shape_cast %22 : vector<8xf32> to vector<8x1xf32>
    %24 = vector.broadcast %23 : vector<8x1xf32> to vector<8x8xf32>
    %25 = arith.subf %21, %24 : vector<8x8xf32>
    %26 = math.exp %25 : vector<8x8xf32>
    %cst_7 = arith.constant dense<0.000000e+00> : vector<8xf32>
    %27 = vector.multi_reduction <add>, %26, %cst_7 [1] : vector<8x8xf32> to vector<8xf32>
    %28 = vector.shape_cast %27 : vector<8xf32> to vector<8x1xf32>
    %29 = tpu.reciprocal %28 {approx = true} : vector<8x1xf32> -> vector<8x1xf32>
    %30 = vector.broadcast %29 : vector<8x1xf32> to vector<8x8xf32>
    %31 = arith.mulf %26, %30 : vector<8x8xf32>
    %32 = arith.truncf %31 : vector<8x8xf32> to vector<8x8xbf16>
    %cst_8 = arith.constant dense<0.000000e+00> : vector<8x8xf32>
    %33 = tpu.matmul %32, %20, %cst_8 {dimension_numbers = #tpu.dot_dimension_numbers<[1], [0], [0], [1], [0, 0, 1, 1], [], []>} : vector<8x8xbf16>, vector<8x8xbf16>, vector<8x8xf32> -> vector<8x8xf32>
    %34 = vector.extract_strided_slice %1 {offsets = [0, 16], sizes = [8, 8], strides = [1, 1]} : vector<8x96xbf16> to vector<8x8xbf16>
    %35 = vector.extract_strided_slice %1 {offsets = [0, 48], sizes = [8, 8], strides = [1, 1]} : vector<8x96xbf16> to vector<8x8xbf16>
    %36 = vector.extract_strided_slice %1 {offsets = [0, 80], sizes = [8, 8], strides = [1, 1]} : vector<8x96xbf16> to vector<8x8xbf16>
    %cst_9 = arith.constant dense<0.000000e+00> : vector<8x8xf32>
    %37 = tpu.matmul %34, %35, %cst_9 {dimension_numbers = #tpu.dot_dimension_numbers<[1], [1], [0], [0], [0, 0, 1, 0], [], []>} : vector<8x8xbf16>, vector<8x8xbf16>, vector<8x8xf32> -> vector<8x8xf32>
    %cst_10 = arith.constant dense<0xFF800000> : vector<8xf32>
    %38 = vector.multi_reduction <maximumf>, %37, %cst_10 [1] : vector<8x8xf32> to vector<8xf32>
    %39 = vector.shape_cast %38 : vector<8xf32> to vector<8x1xf32>
    %40 = vector.broadcast %39 : vector<8x1xf32> to vector<8x8xf32>
    %41 = arith.subf %37, %40 : vector<8x8xf32>
    %42 = math.exp %41 : vector<8x8xf32>
    %cst_11 = arith.constant dense<0.000000e+00> : vector<8xf32>
    %43 = vector.multi_reduction <add>, %42, %cst_11 [1] : vector<8x8xf32> to vector<8xf32>
    %44 = vector.shape_cast %43 : vector<8xf32> to vector<8x1xf32>
    %45 = tpu.reciprocal %44 {approx = true} : vector<8x1xf32> -> vector<8x1xf32>
    %46 = vector.broadcast %45 : vector<8x1xf32> to vector<8x8xf32>
    %47 = arith.mulf %42, %46 : vector<8x8xf32>
    %48 = arith.truncf %47 : vector<8x8xf32> to vector<8x8xbf16>
    %cst_12 = arith.constant dense<0.000000e+00> : vector<8x8xf32>
    %49 = tpu.matmul %48, %36, %cst_12 {dimension_numbers = #tpu.dot_dimension_numbers<[1], [0], [0], [1], [0, 0, 1, 1], [], []>} : vector<8x8xbf16>, vector<8x8xbf16>, vector<8x8xf32> -> vector<8x8xf32>
    %50 = vector.extract_strided_slice %1 {offsets = [0, 24], sizes = [8, 8], strides = [1, 1]} : vector<8x96xbf16> to vector<8x8xbf16>
    %51 = vector.extract_strided_slice %1 {offsets = [0, 56], sizes = [8, 8], strides = [1, 1]} : vector<8x96xbf16> to vector<8x8xbf16>
    %52 = vector.extract_strided_slice %1 {offsets = [0, 88], sizes = [8, 8], strides = [1, 1]} : vector<8x96xbf16> to vector<8x8xbf16>
    %cst_13 = arith.constant dense<0.000000e+00> : vector<8x8xf32>
    %53 = tpu.matmul %50, %51, %cst_13 {dimension_numbers = #tpu.dot_dimension_numbers<[1], [1], [0], [0], [0, 0, 1, 0], [], []>} : vector<8x8xbf16>, vector<8x8xbf16>, vector<8x8xf32> -> vector<8x8xf32>
    %cst_14 = arith.constant dense<0xFF800000> : vector<8xf32>
    %54 = vector.multi_reduction <maximumf>, %53, %cst_14 [1] : vector<8x8xf32> to vector<8xf32>
    %55 = vector.shape_cast %54 : vector<8xf32> to vector<8x1xf32>
    %56 = vector.broadcast %55 : vector<8x1xf32> to vector<8x8xf32>
    %57 = arith.subf %53, %56 : vector<8x8xf32>
    %58 = math.exp %57 : vector<8x8xf32>
    %cst_15 = arith.constant dense<0.000000e+00> : vector<8xf32>
    %59 = vector.multi_reduction <add>, %58, %cst_15 [1] : vector<8x8xf32> to vector<8xf32>
    %60 = vector.shape_cast %59 : vector<8xf32> to vector<8x1xf32>
    %61 = tpu.reciprocal %60 {approx = true} : vector<8x1xf32> -> vector<8x1xf32>
    %62 = vector.broadcast %61 : vector<8x1xf32> to vector<8x8xf32>
    %63 = arith.mulf %58, %62 : vector<8x8xf32>
    %64 = arith.truncf %63 : vector<8x8xf32> to vector<8x8xbf16>
    %cst_16 = arith.constant dense<0.000000e+00> : vector<8x8xf32>
    %65 = tpu.matmul %64, %52, %cst_16 {dimension_numbers = #tpu.dot_dimension_numbers<[1], [0], [0], [1], [0, 0, 1, 1], [], []>} : vector<8x8xbf16>, vector<8x8xbf16>, vector<8x8xf32> -> vector<8x8xf32>
    %66 = tpu.concatenate %17, %33, %49, %65 in 1 : vector<8x8xf32>, vector<8x8xf32>, vector<8x8xf32>, vector<8x8xf32> -> vector<8x32xf32>
    %67 = arith.truncf %66 : vector<8x32xf32> to vector<8x32xbf16>
    %c0_17 = arith.constant 0 : index
    %c0_18 = arith.constant 0 : index
    %c0_19 = arith.constant 0 : index
    %68 = vector.load %arg2[%c0_17, %c0_18, %c0_19] : memref<1x8x32xbf16, #tpu.memory_space<vmem>>, vector<1x8x32xbf16>
    %69 = vector.shape_cast %68 : vector<1x8x32xbf16> to vector<8x32xbf16>
    %70 = vector.shape_cast %67 : vector<8x32xbf16> to vector<1x8x32xbf16>
    tpu.vector_store %arg2[%c0_17, %c0_18, %c0_19], %70 {strides = array<i32>} : memref<1x8x32xbf16, #tpu.memory_space<vmem>>, vector<1x8x32xbf16>,
    return
  }
  func.func @transform_0(%arg0: i32) -> (i32, i32, i32) {
    %c0_i32 = arith.constant 0 : i32
    %c0_i32_0 = arith.constant 0 : i32
    %c0_i32_1 = arith.constant 0 : i32
    return %arg0, %c0_i32, %c0_i32_0 : i32, i32, i32
  }
  func.func @transform_1(%arg0: i32) -> (i32, i32, i32) {
    %c0_i32 = arith.constant 0 : i32
    %c0_i32_0 = arith.constant 0 : i32
    %c0_i32_1 = arith.constant 0 : i32
    return %arg0, %c0_i32, %c0_i32_0 : i32, i32, i32
  }
}

module attributes {stable_mosaic.version = 11 : i64} {
  func.func @_matmul_bias_kernel(%arg0: i32, %arg1: i32, %arg2: i32, %arg3: memref<16x32xbf16, #tpu.memory_space<vmem>>, %arg4: memref<32x96xbf16, #tpu.memory_space<vmem>>, %arg5: memref<1x96xf32, #tpu.memory_space<vmem>>, %arg6: memref<16x96xbf16, #tpu.memory_space<vmem>>, %arg7: memref<16x96xf32, #tpu.memory_space<vmem>>) attributes {dimension_semantics = [#tpu.dimension_semantics<parallel>, #tpu.dimension_semantics<parallel>, #tpu.dimension_semantics<arbitrary>], iteration_bounds = array<i64: 1, 1, 1>, scalar_prefetch = 0 : i64, scratch_operands = 1 : i64, tpu.core_type = #tpu.core_type<tc>, window_params = [{transform_indices = @transform_0, window_bounds = array<i64: 16, 32>}, {transform_indices = @transform_1, window_bounds = array<i64: 32, 96>}, {transform_indices = @transform_2, window_bounds = array<i64: 1, 96>}, {transform_indices = @transform_3, window_bounds = array<i64: 16, 96>}]} {
    %c0_i32 = arith.constant 0 : i32
    %0 = arith.cmpi eq, %arg2, %c0_i32 : i32
    %1 = arith.extui %0 : i1 to i32
    %c0_i32_0 = arith.constant 0 : i32
    %2 = arith.cmpi ne, %1, %c0_i32_0 : i32
    scf.if %2 {
      %cst_10 = arith.constant 0.000000e+00 : f32
      %12 = vector.broadcast %cst_10 : f32 to vector<16x96xf32>
      %c0_11 = arith.constant 0 : index
      %c0_12 = arith.constant 0 : index
      %13 = vector.load %arg7[%c0_11, %c0_12] : memref<16x96xf32, #tpu.memory_space<vmem>>, vector<16x96xf32>
      tpu.vector_store %arg7[%c0_11, %c0_12], %12 {strides = array<i32>} : memref<16x96xf32, #tpu.memory_space<vmem>>, vector<16x96xf32>,
    } else {
    }
    %c0 = arith.constant 0 : index
    %c0_1 = arith.constant 0 : index
    %3 = vector.load %arg7[%c0, %c0_1] : memref<16x96xf32, #tpu.memory_space<vmem>>, vector<16x96xf32>
    %c0_2 = arith.constant 0 : index
    %c0_3 = arith.constant 0 : index
    %4 = vector.load %arg3[%c0_2, %c0_3] : memref<16x32xbf16, #tpu.memory_space<vmem>>, vector<16x32xbf16>
    %c0_4 = arith.constant 0 : index
    %c0_5 = arith.constant 0 : index
    %5 = vector.load %arg4[%c0_4, %c0_5] : memref<32x96xbf16, #tpu.memory_space<vmem>>, vector<32x96xbf16>
    %cst = arith.constant dense<0.000000e+00> : vector<16x96xf32>
    %6 = tpu.matmul %4, %5, %cst {dimension_numbers = #tpu.dot_dimension_numbers<[1], [0], [0], [1], [0, 0, 1, 1], [], []>} : vector<16x32xbf16>, vector<32x96xbf16>, vector<16x96xf32> -> vector<16x96xf32>
    %7 = arith.addf %3, %6 : vector<16x96xf32>
    %c0_6 = arith.constant 0 : index
    %c0_7 = arith.constant 0 : index
    %8 = vector.load %arg7[%c0_6, %c0_7] : memref<16x96xf32, #tpu.memory_space<vmem>>, vector<16x96xf32>
    tpu.vector_store %arg7[%c0_6, %c0_7], %7 {strides = array<i32>} : memref<16x96xf32, #tpu.memory_space<vmem>>, vector<16x96xf32>,
    %c0_i32_8 = arith.constant 0 : i32
    %9 = arith.cmpi eq, %arg2, %c0_i32_8 : i32
    %10 = arith.extui %9 : i1 to i32
    %c0_i32_9 = arith.constant 0 : i32
    %11 = arith.cmpi ne, %10, %c0_i32_9 : i32
    scf.if %11 {
      %c0_10 = arith.constant 0 : index
      %c0_11 = arith.constant 0 : index
      %12 = vector.load %arg7[%c0_10, %c0_11] : memref<16x96xf32, #tpu.memory_space<vmem>>, vector<16x96xf32>
      %c0_12 = arith.constant 0 : index
      %c0_13 = arith.constant 0 : index
      %13 = vector.load %arg5[%c0_12, %c0_13] : memref<1x96xf32, #tpu.memory_space<vmem>>, vector<1x96xf32>
      %14 = vector.broadcast %13 : vector<1x96xf32> to vector<16x96xf32>
      %15 = arith.addf %12, %14 : vector<16x96xf32>
      %16 = arith.truncf %15 : vector<16x96xf32> to vector<16x96xbf16>
      %c0_14 = arith.constant 0 : index
      %c0_15 = arith.constant 0 : index
      %17 = vector.load %arg6[%c0_14, %c0_15] : memref<16x96xbf16, #tpu.memory_space<vmem>>, vector<16x96xbf16>
      tpu.vector_store %arg6[%c0_14, %c0_15], %16 {strides = array<i32>} : memref<16x96xbf16, #tpu.memory_space<vmem>>, vector<16x96xbf16>,
    } else {
    }
    return
  }
  func.func @transform_0(%arg0: i32, %arg1: i32, %arg2: i32) -> (i32, i32) {
    %c0_i32 = arith.constant 0 : i32
    return %arg0, %arg2 : i32, i32
  }
  func.func @transform_1(%arg0: i32, %arg1: i32, %arg2: i32) -> (i32, i32) {
    %c0_i32 = arith.constant 0 : i32
    return %arg2, %arg1 : i32, i32
  }
  func.func @transform_2(%arg0: i32, %arg1: i32, %arg2: i32) -> (i32, i32) {
    %c0_i32 = arith.constant 0 : i32
    %c0_i32_0 = arith.constant 0 : i32
    return %c0_i32, %arg1 : i32, i32
  }
  func.func @transform_3(%arg0: i32, %arg1: i32, %arg2: i32) -> (i32, i32) {
    %c0_i32 = arith.constant 0 : i32
    return %arg0, %arg1 : i32, i32
  }
}

module attributes {stable_mosaic.version = 11 : i64} {
  func.func @_matmul_res_ln_kernel(%arg0: i32, %arg1: i32, %arg2: memref<16x32xbf16, #tpu.memory_space<vmem>>, %arg3: memref<32x32xbf16, #tpu.memory_space<vmem>>, %arg4: memref<1x32xf32, #tpu.memory_space<vmem>>, %arg5: memref<16x32xbf16, #tpu.memory_space<vmem>>, %arg6: memref<1x32xf32, #tpu.memory_space<vmem>>, %arg7: memref<1x32xf32, #tpu.memory_space<vmem>>, %arg8: memref<16x32xbf16, #tpu.memory_space<vmem>>, %arg9: memref<16x32xf32, #tpu.memory_space<vmem>>) attributes {dimension_semantics = [#tpu.dimension_semantics<parallel>, #tpu.dimension_semantics<arbitrary>], iteration_bounds = array<i64: 1, 1>, scalar_prefetch = 0 : i64, scratch_operands = 1 : i64, tpu.core_type = #tpu.core_type<tc>, window_params = [{transform_indices = @transform_0, window_bounds = array<i64: 16, 32>}, {transform_indices = @transform_1, window_bounds = array<i64: 32, 32>}, {pipeline_mode = #tpu.pipeline_mode<synchronous>, transform_indices = @transform_2, window_bounds = array<i64: 1, 32>}, {transform_indices = @transform_3, window_bounds = array<i64: 16, 32>}, {pipeline_mode = #tpu.pipeline_mode<synchronous>, transform_indices = @transform_4, window_bounds = array<i64: 1, 32>}, {pipeline_mode = #tpu.pipeline_mode<synchronous>, transform_indices = @transform_5, window_bounds = array<i64: 1, 32>}, {transform_indices = @transform_6, window_bounds = array<i64: 16, 32>}]} {
    %c0_i32 = arith.constant 0 : i32
    %0 = arith.cmpi eq, %arg1, %c0_i32 : i32
    %1 = arith.extui %0 : i1 to i32
    %c0_i32_0 = arith.constant 0 : i32
    %2 = arith.cmpi ne, %1, %c0_i32_0 : i32
    scf.if %2 {
      %cst_10 = arith.constant 0.000000e+00 : f32
      %12 = vector.broadcast %cst_10 : f32 to vector<16x32xf32>
      %c0_11 = arith.constant 0 : index
      %c0_12 = arith.constant 0 : index
      %13 = vector.load %arg9[%c0_11, %c0_12] : memref<16x32xf32, #tpu.memory_space<vmem>>, vector<16x32xf32>
      tpu.vector_store %arg9[%c0_11, %c0_12], %12 {strides = array<i32>} : memref<16x32xf32, #tpu.memory_space<vmem>>, vector<16x32xf32>,
    } else {
    }
    %c0 = arith.constant 0 : index
    %c0_1 = arith.constant 0 : index
    %3 = vector.load %arg9[%c0, %c0_1] : memref<16x32xf32, #tpu.memory_space<vmem>>, vector<16x32xf32>
    %c0_2 = arith.constant 0 : index
    %c0_3 = arith.constant 0 : index
    %4 = vector.load %arg2[%c0_2, %c0_3] : memref<16x32xbf16, #tpu.memory_space<vmem>>, vector<16x32xbf16>
    %c0_4 = arith.constant 0 : index
    %c0_5 = arith.constant 0 : index
    %5 = vector.load %arg3[%c0_4, %c0_5] : memref<32x32xbf16, #tpu.memory_space<vmem>>, vector<32x32xbf16>
    %cst = arith.constant dense<0.000000e+00> : vector<16x32xf32>
    %6 = tpu.matmul %4, %5, %cst {dimension_numbers = #tpu.dot_dimension_numbers<[1], [0], [0], [1], [0, 0, 1, 1], [], []>} : vector<16x32xbf16>, vector<32x32xbf16>, vector<16x32xf32> -> vector<16x32xf32>
    %7 = arith.addf %3, %6 : vector<16x32xf32>
    %c0_6 = arith.constant 0 : index
    %c0_7 = arith.constant 0 : index
    %8 = vector.load %arg9[%c0_6, %c0_7] : memref<16x32xf32, #tpu.memory_space<vmem>>, vector<16x32xf32>
    tpu.vector_store %arg9[%c0_6, %c0_7], %7 {strides = array<i32>} : memref<16x32xf32, #tpu.memory_space<vmem>>, vector<16x32xf32>,
    %c0_i32_8 = arith.constant 0 : i32
    %9 = arith.cmpi eq, %arg1, %c0_i32_8 : i32
    %10 = arith.extui %9 : i1 to i32
    %c0_i32_9 = arith.constant 0 : i32
    %11 = arith.cmpi ne, %10, %c0_i32_9 : i32
    scf.if %11 {
      %c0_10 = arith.constant 0 : index
      %c0_11 = arith.constant 0 : index
      %12 = vector.load %arg9[%c0_10, %c0_11] : memref<16x32xf32, #tpu.memory_space<vmem>>, vector<16x32xf32>
      %c0_12 = arith.constant 0 : index
      %c0_13 = arith.constant 0 : index
      %13 = vector.load %arg4[%c0_12, %c0_13] : memref<1x32xf32, #tpu.memory_space<vmem>>, vector<1x32xf32>
      %14 = vector.broadcast %13 : vector<1x32xf32> to vector<16x32xf32>
      %15 = arith.addf %12, %14 : vector<16x32xf32>
      %c0_14 = arith.constant 0 : index
      %c0_15 = arith.constant 0 : index
      %16 = vector.load %arg5[%c0_14, %c0_15] : memref<16x32xbf16, #tpu.memory_space<vmem>>, vector<16x32xbf16>
      %17 = arith.extf %16 : vector<16x32xbf16> to vector<16x32xf32>
      %18 = arith.addf %15, %17 : vector<16x32xf32>
      %cst_16 = arith.constant dense<0.000000e+00> : vector<16xf32>
      %19 = vector.multi_reduction <add>, %18, %cst_16 [1] : vector<16x32xf32> to vector<16xf32>
      %20 = vector.shape_cast %19 : vector<16xf32> to vector<16x1xf32>
      %cst_17 = arith.constant 3.200000e+01 : f32
      %21 = vector.broadcast %cst_17 : f32 to vector<16x1xf32>
      %22 = arith.divf %20, %21 : vector<16x1xf32>
      %23 = vector.broadcast %22 : vector<16x1xf32> to vector<16x32xf32>
      %24 = arith.subf %18, %23 : vector<16x32xf32>
      %25 = arith.mulf %24, %24 : vector<16x32xf32>
      %cst_18 = arith.constant dense<0.000000e+00> : vector<16xf32>
      %26 = vector.multi_reduction <add>, %25, %cst_18 [1] : vector<16x32xf32> to vector<16xf32>
      %27 = vector.shape_cast %26 : vector<16xf32> to vector<16x1xf32>
      %cst_19 = arith.constant 3.200000e+01 : f32
      %28 = vector.broadcast %cst_19 : f32 to vector<16x1xf32>
      %29 = arith.divf %27, %28 : vector<16x1xf32>
      %cst_20 = arith.constant 9.99999974E-6 : f32
      %30 = vector.broadcast %cst_20 : f32 to vector<16x1xf32>
      %31 = arith.addf %29, %30 : vector<16x1xf32>
      %32 = math.rsqrt %31 : vector<16x1xf32>
      %33 = vector.broadcast %32 : vector<16x1xf32> to vector<16x32xf32>
      %34 = arith.mulf %24, %33 : vector<16x32xf32>
      %c0_21 = arith.constant 0 : index
      %c0_22 = arith.constant 0 : index
      %35 = vector.load %arg6[%c0_21, %c0_22] : memref<1x32xf32, #tpu.memory_space<vmem>>, vector<1x32xf32>
      %36 = vector.broadcast %35 : vector<1x32xf32> to vector<16x32xf32>
      %37 = arith.mulf %34, %36 : vector<16x32xf32>
      %c0_23 = arith.constant 0 : index
      %c0_24 = arith.constant 0 : index
      %38 = vector.load %arg7[%c0_23, %c0_24] : memref<1x32xf32, #tpu.memory_space<vmem>>, vector<1x32xf32>
      %39 = vector.broadcast %38 : vector<1x32xf32> to vector<16x32xf32>
      %40 = arith.addf %37, %39 : vector<16x32xf32>
      %41 = arith.truncf %40 : vector<16x32xf32> to vector<16x32xbf16>
      %c0_25 = arith.constant 0 : index
      %c0_26 = arith.constant 0 : index
      %42 = vector.load %arg8[%c0_25, %c0_26] : memref<16x32xbf16, #tpu.memory_space<vmem>>, vector<16x32xbf16>
      tpu.vector_store %arg8[%c0_25, %c0_26], %41 {strides = array<i32>} : memref<16x32xbf16, #tpu.memory_space<vmem>>, vector<16x32xbf16>,
    } else {
    }
    return
  }
  func.func @transform_0(%arg0: i32, %arg1: i32) -> (i32, i32) {
    %c0_i32 = arith.constant 0 : i32
    return %arg0, %arg1 : i32, i32
  }
  func.func @transform_1(%arg0: i32, %arg1: i32) -> (i32, i32) {
    %c0_i32 = arith.constant 0 : i32
    %c0_i32_0 = arith.constant 0 : i32
    return %arg1, %c0_i32 : i32, i32
  }
  func.func @transform_2(%arg0: i32, %arg1: i32) -> (i32, i32) {
    %c0_i32 = arith.constant 0 : i32
    %c0_i32_0 = arith.constant 0 : i32
    %c0_i32_1 = arith.constant 0 : i32
    return %c0_i32, %c0_i32_0 : i32, i32
  }
  func.func @transform_3(%arg0: i32, %arg1: i32) -> (i32, i32) {
    %c0_i32 = arith.constant 0 : i32
    %c0_i32_0 = arith.constant 0 : i32
    return %arg0, %c0_i32 : i32, i32
  }
  func.func @transform_4(%arg0: i32, %arg1: i32) -> (i32, i32) {
    %c0_i32 = arith.constant 0 : i32
    %c0_i32_0 = arith.constant 0 : i32
    %c0_i32_1 = arith.constant 0 : i32
    return %c0_i32, %c0_i32_0 : i32, i32
  }
  func.func @transform_5(%arg0: i32, %arg1: i32) -> (i32, i32) {
    %c0_i32 = arith.constant 0 : i32
    %c0_i32_0 = arith.constant 0 : i32
    %c0_i32_1 = arith.constant 0 : i32
    return %c0_i32, %c0_i32_0 : i32, i32
  }
  func.func @transform_6(%arg0: i32, %arg1: i32) -> (i32, i32) {
    %c0_i32 = arith.constant 0 : i32
    %c0_i32_0 = arith.constant 0 : i32
    return %arg0, %c0_i32 : i32, i32
  }
}

module attributes {stable_mosaic.version = 11 : i64} {
  func.func @_ffn_res_ln_kernel(%arg0: i32, %arg1: memref<16x32xbf16, #tpu.memory_space<vmem>>, %arg2: memref<32x32xbf16, #tpu.memory_space<vmem>>, %arg3: memref<1x32xf32, #tpu.memory_space<vmem>>, %arg4: memref<32x32xbf16, #tpu.memory_space<vmem>>, %arg5: memref<1x32xf32, #tpu.memory_space<vmem>>, %arg6: memref<16x32xbf16, #tpu.memory_space<vmem>>, %arg7: memref<1x32xf32, #tpu.memory_space<vmem>>, %arg8: memref<1x32xf32, #tpu.memory_space<vmem>>, %arg9: memref<16x32xbf16, #tpu.memory_space<vmem>>) attributes {dimension_semantics = [#tpu.dimension_semantics<parallel>], iteration_bounds = array<i64: 1>, scalar_prefetch = 0 : i64, scratch_operands = 0 : i64, tpu.core_type = #tpu.core_type<tc>, window_params = [{transform_indices = @transform_0, window_bounds = array<i64: 16, 32>}, {pipeline_mode = #tpu.pipeline_mode<synchronous>, transform_indices = @transform_1, window_bounds = array<i64: 32, 32>}, {pipeline_mode = #tpu.pipeline_mode<synchronous>, transform_indices = @transform_2, window_bounds = array<i64: 1, 32>}, {pipeline_mode = #tpu.pipeline_mode<synchronous>, transform_indices = @transform_3, window_bounds = array<i64: 32, 32>}, {pipeline_mode = #tpu.pipeline_mode<synchronous>, transform_indices = @transform_4, window_bounds = array<i64: 1, 32>}, {transform_indices = @transform_5, window_bounds = array<i64: 16, 32>}, {pipeline_mode = #tpu.pipeline_mode<synchronous>, transform_indices = @transform_6, window_bounds = array<i64: 1, 32>}, {pipeline_mode = #tpu.pipeline_mode<synchronous>, transform_indices = @transform_7, window_bounds = array<i64: 1, 32>}, {transform_indices = @transform_8, window_bounds = array<i64: 16, 32>}]} {
    %c0 = arith.constant 0 : index
    %c0_0 = arith.constant 0 : index
    %0 = vector.load %arg1[%c0, %c0_0] : memref<16x32xbf16, #tpu.memory_space<vmem>>, vector<16x32xbf16>
    %c0_1 = arith.constant 0 : index
    %c0_2 = arith.constant 0 : index
    %1 = vector.load %arg2[%c0_1, %c0_2] : memref<32x32xbf16, #tpu.memory_space<vmem>>, vector<32x32xbf16>
    %cst = arith.constant dense<0.000000e+00> : vector<16x32xf32>
    %2 = tpu.matmul %0, %1, %cst {dimension_numbers = #tpu.dot_dimension_numbers<[1], [0], [0], [1], [0, 0, 1, 1], [], []>} : vector<16x32xbf16>, vector<32x32xbf16>, vector<16x32xf32> -> vector<16x32xf32>
    %c0_3 = arith.constant 0 : index
    %c0_4 = arith.constant 0 : index
    %3 = vector.load %arg3[%c0_3, %c0_4] : memref<1x32xf32, #tpu.memory_space<vmem>>, vector<1x32xf32>
    %4 = vector.broadcast %3 : vector<1x32xf32> to vector<16x32xf32>
    %5 = arith.addf %2, %4 : vector<16x32xf32>
    %cst_5 = arith.constant 0.000000e+00 : f32
    %6 = vector.broadcast %cst_5 : f32 to vector<16x32xf32>
    %7 = arith.maximumf %5, %6 : vector<16x32xf32>
    %8 = arith.truncf %7 : vector<16x32xf32> to vector<16x32xbf16>
    %c0_6 = arith.constant 0 : index
    %c0_7 = arith.constant 0 : index
    %9 = vector.load %arg4[%c0_6, %c0_7] : memref<32x32xbf16, #tpu.memory_space<vmem>>, vector<32x32xbf16>
    %cst_8 = arith.constant dense<0.000000e+00> : vector<16x32xf32>
    %10 = tpu.matmul %8, %9, %cst_8 {dimension_numbers = #tpu.dot_dimension_numbers<[1], [0], [0], [1], [0, 0, 1, 1], [], []>} : vector<16x32xbf16>, vector<32x32xbf16>, vector<16x32xf32> -> vector<16x32xf32>
    %c0_9 = arith.constant 0 : index
    %c0_10 = arith.constant 0 : index
    %11 = vector.load %arg5[%c0_9, %c0_10] : memref<1x32xf32, #tpu.memory_space<vmem>>, vector<1x32xf32>
    %12 = vector.broadcast %11 : vector<1x32xf32> to vector<16x32xf32>
    %13 = arith.addf %10, %12 : vector<16x32xf32>
    %c0_11 = arith.constant 0 : index
    %c0_12 = arith.constant 0 : index
    %14 = vector.load %arg6[%c0_11, %c0_12] : memref<16x32xbf16, #tpu.memory_space<vmem>>, vector<16x32xbf16>
    %15 = arith.extf %14 : vector<16x32xbf16> to vector<16x32xf32>
    %16 = arith.addf %13, %15 : vector<16x32xf32>
    %cst_13 = arith.constant dense<0.000000e+00> : vector<16xf32>
    %17 = vector.multi_reduction <add>, %16, %cst_13 [1] : vector<16x32xf32> to vector<16xf32>
    %18 = vector.shape_cast %17 : vector<16xf32> to vector<16x1xf32>
    %cst_14 = arith.constant 3.200000e+01 : f32
    %19 = vector.broadcast %cst_14 : f32 to vector<16x1xf32>
    %20 = arith.divf %18, %19 : vector<16x1xf32>
    %21 = vector.broadcast %20 : vector<16x1xf32> to vector<16x32xf32>
    %22 = arith.subf %16, %21 : vector<16x32xf32>
    %23 = arith.mulf %22, %22 : vector<16x32xf32>
    %cst_15 = arith.constant dense<0.000000e+00> : vector<16xf32>
    %24 = vector.multi_reduction <add>, %23, %cst_15 [1] : vector<16x32xf32> to vector<16xf32>
    %25 = vector.shape_cast %24 : vector<16xf32> to vector<16x1xf32>
    %cst_16 = arith.constant 3.200000e+01 : f32
    %26 = vector.broadcast %cst_16 : f32 to vector<16x1xf32>
    %27 = arith.divf %25, %26 : vector<16x1xf32>
    %cst_17 = arith.constant 9.99999974E-6 : f32
    %28 = vector.broadcast %cst_17 : f32 to vector<16x1xf32>
    %29 = arith.addf %27, %28 : vector<16x1xf32>
    %30 = math.rsqrt %29 : vector<16x1xf32>
    %31 = vector.broadcast %30 : vector<16x1xf32> to vector<16x32xf32>
    %32 = arith.mulf %22, %31 : vector<16x32xf32>
    %c0_18 = arith.constant 0 : index
    %c0_19 = arith.constant 0 : index
    %33 = vector.load %arg7[%c0_18, %c0_19] : memref<1x32xf32, #tpu.memory_space<vmem>>, vector<1x32xf32>
    %34 = vector.broadcast %33 : vector<1x32xf32> to vector<16x32xf32>
    %35 = arith.mulf %32, %34 : vector<16x32xf32>
    %c0_20 = arith.constant 0 : index
    %c0_21 = arith.constant 0 : index
    %36 = vector.load %arg8[%c0_20, %c0_21] : memref<1x32xf32, #tpu.memory_space<vmem>>, vector<1x32xf32>
    %37 = vector.broadcast %36 : vector<1x32xf32> to vector<16x32xf32>
    %38 = arith.addf %35, %37 : vector<16x32xf32>
    %39 = arith.truncf %38 : vector<16x32xf32> to vector<16x32xbf16>
    %c0_22 = arith.constant 0 : index
    %c0_23 = arith.constant 0 : index
    %40 = vector.load %arg9[%c0_22, %c0_23] : memref<16x32xbf16, #tpu.memory_space<vmem>>, vector<16x32xbf16>
    tpu.vector_store %arg9[%c0_22, %c0_23], %39 {strides = array<i32>} : memref<16x32xbf16, #tpu.memory_space<vmem>>, vector<16x32xbf16>,
    return
  }
  func.func @transform_0(%arg0: i32) -> (i32, i32) {
    %c0_i32 = arith.constant 0 : i32
    %c0_i32_0 = arith.constant 0 : i32
    return %arg0, %c0_i32 : i32, i32
  }
  func.func @transform_1(%arg0: i32) -> (i32, i32) {
    %c0_i32 = arith.constant 0 : i32
    %c0_i32_0 = arith.constant 0 : i32
    %c0_i32_1 = arith.constant 0 : i32
    return %c0_i32, %c0_i32_0 : i32, i32
  }
  func.func @transform_2(%arg0: i32) -> (i32, i32) {
    %c0_i32 = arith.constant 0 : i32
    %c0_i32_0 = arith.constant 0 : i32
    %c0_i32_1 = arith.constant 0 : i32
    return %c0_i32, %c0_i32_0 : i32, i32
  }
  func.func @transform_3(%arg0: i32) -> (i32, i32) {
    %c0_i32 = arith.constant 0 : i32
    %c0_i32_0 = arith.constant 0 : i32
    %c0_i32_1 = arith.constant 0 : i32
    return %c0_i32, %c0_i32_0 : i32, i32
  }
  func.func @transform_4(%arg0: i32) -> (i32, i32) {
    %c0_i32 = arith.constant 0 : i32
    %c0_i32_0 = arith.constant 0 : i32
    %c0_i32_1 = arith.constant 0 : i32
    return %c0_i32, %c0_i32_0 : i32, i32
  }
  func.func @transform_5(%arg0: i32) -> (i32, i32) {
    %c0_i32 = arith.constant 0 : i32
    %c0_i32_0 = arith.constant 0 : i32
    return %arg0, %c0_i32 : i32, i32
  }
  func.func @transform_6(%arg0: i32) -> (i32, i32) {
    %c0_i32 = arith.constant 0 : i32
    %c0_i32_0 = arith.constant 0 : i32
    %c0_i32_1 = arith.constant 0 : i32
    return %c0_i32, %c0_i32_0 : i32, i32
  }
  func.func @transform_7(%arg0: i32) -> (i32, i32) {
    %c0_i32 = arith.constant 0 : i32
    %c0_i32_0 = arith.constant 0 : i32
    %c0_i32_1 = arith.constant 0 : i32
    return %c0_i32, %c0_i32_0 : i32, i32
  }
  func.func @transform_8(%arg0: i32) -> (i32, i32) {
    %c0_i32 = arith.constant 0 : i32
    %c0_i32_0 = arith.constant 0 : i32
    return %arg0, %c0_i32 : i32, i32
  }
}

module attributes {stable_mosaic.version = 11 : i64} {
  func.func @_mean_time_kernel(%arg0: i32, %arg1: i32, %arg2: memref<2x8x32xbf16, #tpu.memory_space<vmem>>, %arg3: memref<2x32xf32, #tpu.memory_space<vmem>>) attributes {dimension_semantics = [#tpu.dimension_semantics<parallel>, #tpu.dimension_semantics<arbitrary>], iteration_bounds = array<i64: 1, 1>, scalar_prefetch = 0 : i64, scratch_operands = 0 : i64, tpu.core_type = #tpu.core_type<tc>, window_params = [{transform_indices = @transform_0, window_bounds = array<i64: 2, 8, 32>}, {transform_indices = @transform_1, window_bounds = array<i64: 2, 32>}]} {
    %c0_i32 = arith.constant 0 : i32
    %0 = arith.cmpi eq, %arg1, %c0_i32 : i32
    %1 = arith.extui %0 : i1 to i32
    %c0_i32_0 = arith.constant 0 : i32
    %2 = arith.cmpi ne, %1, %c0_i32_0 : i32
    scf.if %2 {
      %cst_8 = arith.constant 0.000000e+00 : f32
      %11 = vector.broadcast %cst_8 : f32 to vector<2x32xf32>
      %c0_9 = arith.constant 0 : index
      %c0_10 = arith.constant 0 : index
      %12 = vector.load %arg3[%c0_9, %c0_10] : memref<2x32xf32, #tpu.memory_space<vmem>>, vector<2x32xf32>
      tpu.vector_store %arg3[%c0_9, %c0_10], %11 {strides = array<i32>} : memref<2x32xf32, #tpu.memory_space<vmem>>, vector<2x32xf32>,
    } else {
    }
    %c0 = arith.constant 0 : index
    %c0_1 = arith.constant 0 : index
    %3 = vector.load %arg3[%c0, %c0_1] : memref<2x32xf32, #tpu.memory_space<vmem>>, vector<2x32xf32>
    %c0_2 = arith.constant 0 : index
    %c0_3 = arith.constant 0 : index
    %c0_4 = arith.constant 0 : index
    %4 = vector.load %arg2[%c0_2, %c0_3, %c0_4] : memref<2x8x32xbf16, #tpu.memory_space<vmem>>, vector<2x8x32xbf16>
    %5 = arith.extf %4 : vector<2x8x32xbf16> to vector<2x8x32xf32>
    %cst = arith.constant dense<0.000000e+00> : vector<2x32xf32>
    %6 = vector.multi_reduction <add>, %5, %cst [1] : vector<2x8x32xf32> to vector<2x32xf32>
    %cst_5 = arith.constant 1.250000e-01 : f32
    %7 = vector.broadcast %cst_5 : f32 to vector<2x32xf32>
    %8 = arith.mulf %6, %7 : vector<2x32xf32>
    %9 = arith.addf %3, %8 : vector<2x32xf32>
    %c0_6 = arith.constant 0 : index
    %c0_7 = arith.constant 0 : index
    %10 = vector.load %arg3[%c0_6, %c0_7] : memref<2x32xf32, #tpu.memory_space<vmem>>, vector<2x32xf32>
    tpu.vector_store %arg3[%c0_6, %c0_7], %9 {strides = array<i32>} : memref<2x32xf32, #tpu.memory_space<vmem>>, vector<2x32xf32>,
    return
  }
  func.func @transform_0(%arg0: i32, %arg1: i32) -> (i32, i32, i32) {
    %c0_i32 = arith.constant 0 : i32
    %c0_i32_0 = arith.constant 0 : i32
    return %arg0, %arg1, %c0_i32 : i32, i32, i32
  }
  func.func @transform_1(%arg0: i32, %arg1: i32) -> (i32, i32) {
    %c0_i32 = arith.constant 0 : i32
    %c0_i32_0 = arith.constant 0 : i32
    return %arg0, %c0_i32 : i32, i32
  }
}

</mosaic_0001>

<bundles_post_ra>
// kernel: transformer_forward.10
= control target key start
LH: loop header
LB: loop body
LE: loop exit
PB: predicated region body
PF: predicated region fallthrough
CT: control target
= control target key end

     0   :  { %vm19_vm0 = vcmask 261120   ;;  %v140_v0 = vmov 0.0   ;;  %vm141_vm1 = vmmov 0   ;;  %vm39_vm2 = vcmask 130048   ;;  %s181_s1 = inlined_call_operand.vmem [shape: bf16[16,32], index: 1, kind: input, shape index: {}]   ;;  %s182_s0 = inlined_call_operand.vmem [shape: bf16[16,16], index: 0, kind: input, shape index: {}]   ;;  %s183_s2 = inlined_call_operand.vmem [shape: f32[1,32], index: 2, kind: input, shape index: {}]   ;;  %s184_s3 = inlined_call_operand.vmem [shape: bf16[16,32], index: 3, kind: output, shape index: {}]  }
   0x1   :  { %20 = vst.msk [vmem:[#allocation2] sm:$0xff] %vm19_vm0, %v140_v0  ;;  %21 = vst.msk [vmem:[#allocation2 + $0x8] sm:$0xff] %vm19_vm0, %v140_v0  ;;  %130 = vmatprep.subr.bf16.mxu0 %v140_v0  ;;  %v138_v1 = vld [vmem:[%s181_s1] sm:$0xff]   ;;  %132 = vmatprep.mubr.msk.bf16.mxu0 %vm141_vm1, %v140_v0  ;;  %vm113_vm3 = vcmask 257024  }
   0x2   :  { %v139_v2 = vld [vmem:[%s182_s0] sm:$0xff]   ;;  %131 = vmatpush3.bf16.msra.mxu0 %v138_v1 }
   0x3   :  { %v123_v11 = vld [vmem:[%s183_s2] ss:$0 sm:$0xff] }
   0x5   :  { %133 = vmatmul.mubr.msk.bf16.vlgmr.msra.gmra.mxu0 %vm39_vm2, %v139_v2 }
   0x8   :  { %v22_v3 = vld [vmem:[#allocation2] sm:$0xff]  ;;  %v23_v7 = vld [vmem:[#allocation2 + $0x8] sm:$0xff] }
  0xc5   :  { %v77_v4 = vpop.f32.mrf.mxu0 }
  0xc6   :  { %v84_v5 = vadd.f32 %v77_v4, %v22_v3 }
  0xc7   :  { %v134_v6 = vpop.f32.mrf.mxu0 }
  0xc8   :  { %87 = vst.msk [vmem:[#allocation2] sm:$0xff] %vm19_vm0, %v84_v5 }
  0xc9   :  { %v80_v8 = vpop.f32.mrf.mxu0 }
  0xca   :  { %v85_v9 = vadd.f32 %v80_v8, %v23_v7 }
  0xcb   :  { %v135_v10 = vpop.f32.mrf.mxu0 }
  0xcc   :  { %88 = vst.msk [vmem:[#allocation2 + $0x8] sm:$0xff] %vm19_vm0, %v85_v9 }
  0xcf   :  { %v92_v12 = vld [vmem:[#allocation2] sm:$0xff] }
  0xd0   :  { %v101_v13 = vadd.f32 %v123_v11, %v92_v12 }
  0xd2   :  { %v103_v14 = vmax.f32 %v101_v13, 0.0 }
  0xd3   :  { %v93_v15 = vld [vmem:[#allocation2 + $0x8] sm:$0xff] }
  0xd4   :  { %v126_v16 = vpack.c.bf16 %v103_v14, %v103_v14  ;;  %v102_v17 = vadd.f32 %v123_v11, %v93_v15 }
  0xd6   :  { %114 = vst.msk [vmem:[%s184_s3] sm:$0xf] %vm113_vm3, %v126_v16  ;;  %v104_v18 = vmax.f32 %v102_v17, 0.0 }
  0xd8   :  { %v127_v19 = vpack.c.bf16 %v104_v18, %v104_v18 }
  0xda   :  { %115 = vst.msk [vmem:[%s184_s3 + $0x4] sm:$0xf] %vm113_vm3, %v127_v19 }

// kernel: transformer_forward.12
= control target key start
LH: loop header
LB: loop body
LE: loop exit
PB: predicated region body
PF: predicated region fallthrough
CT: control target
= control target key end

     0   :  { %s787_s6 = smov 0   ;;  %s876_s0 = inlined_call_operand.vmem [shape: bf16[2,8,96], index: 0, kind: input, shape index: {}]   ;;  %s877_s1 = inlined_call_operand.vmem [shape: bf16[2,8,32], index: 1, kind: output, shape index: {}]  }
   0x1 LB: > { %s630_s7 = sadd.s32 4294967295, %s759_s6   ;;  %p634_p0 = scmp.ge.s32.totalorder %s759_s6, 1  ;;  %s759_s6 = sphi %s787_s6, %s11_s6  }
   0x2   : > { %p86_p1 = scmp.lt.s32.totalorder %s759_s6, 3 }
   0x4   : > { %p87_p2 = pnand %p634_p0, %p86_p1 }
   0x5   : > { %p104_p3 = scmp.lt.s32.totalorder (!%p87_p2), %s630_s7, 1  ;;  %s763_s12 = smov (!%p87_p2), 96  }
   0x6   : > { %90 = sbr.rel (%p87_p2) target bundleno = 1535 (0x5ff), region = 24  ;;  %s764_s13 = smov (!%p87_p2), 64  }
   0x7   : > { %s765_s14 = smov (!%p87_p2), 88   ;;  %s766_s15 = smov (!%p87_p2), 72  }
   0x8   : > { %s767_s16 = smov (!%p87_p2), 120   ;;  %s768_s17 = smov (!%p87_p2), 80  }
   0x9   : > { %s769_s18 = smov (!%p87_p2), 112   ;;  %s770_s19 = smov (!%p87_p2), 104  }
   0xa   : > { %s771_s20 = smov (!%p87_p2), 56   ;;  %s772_s21 = smov (!%p87_p2), 48  }
   0xb   : > { %v761_v0 = vmov 0.0   ;;  %vm762_vm0 = vmmov 0   ;;  %s879_s7 = smov (!%p104_p3, %s630_s7), 1  ;;  %vm119_vm1 = vcmask 64512   ;;  %vm183_vm2 = vcmask 1043456   ;;  %s773_s22 = smov 40  }
   0xc   : > { %664 = vmatprep.subr.bf16.mxu0 %v761_v0  ;;  %666 = vmatprep.mubr.msk.bf16.mxu0 %vm762_vm0, %v761_v0  ;;  %s635_s8 = sshll.u32 %s879_s7, 2  ;;  %s774_s23 = smov 8   ;;  %vm570_vm3 = vcmask 130048   ;;  %vm572_vm4 = vcmask 195584   ;;  %vm575_vm5 = vcmask 257024  }
   0xd   : > { %670 = vmatprep.subr.bf16.mxu1 %v761_v0  ;;  %672 = vmatprep.mubr.msk.bf16.mxu1 %vm762_vm0, %v761_v0  ;;  %s107_s11 = scalar_lea.vmem %s876_s0, %s635_s8  ;;  %s775_s24 = smov 16  }
   0xe   : > { %v113_v1 = vld [vmem:[%s107_s11] sm:$0xf]  ;;  %s776_s25 = smov 24   ;;  %s111_s28 = scalar_lea.vmem %s877_s1, %s635_s8 }
   0xf   : > { %v809_v2 = vcombine.low %v113_v1, %v113_v1 }
  0x11   : > { %117 = vrot.lane.b32.xlu0 %v809_v2, %s763_s12  ;;  %178 = vrot.lane.b32.xlu1 %v809_v2, %s764_s13 }
  0x15   : > { %229 = vrot.lane.b32.xlu1 %v809_v2, %s765_s14 }
  0x83   : > { %v118_v3 = vpop.permute.xlu0 %117  ;;  %v179_v10 = vpop.permute.xlu1 %178 }
  0x84   : > { %v124_v4 = vsel %vm119_vm1, %v118_v3, 0  ;;  %v185_v11 = vsel %vm183_vm2, %v179_v10, 0 }
  0x85   : > { %665 = vmatpush3.bf16.xpose.msra.mxu0 %v124_v4  ;;  %671 = vmatpush3.bf16.msra.mxu1 %v185_v11 }
  0x86   : > { %682 = vmatprep.subr.bf16.mxu0 %v761_v0  ;;  %676 = vmatprep.subr.bf16.mxu1 %v761_v0 }
  0x87   : > { %v230_v17 = vpop.permute.xlu1 %229 }
  0x88   : > { %v235_v23 = vsel %vm119_vm1, %v230_v17, 0 }
  0x8c   : > { %667 = vmatmul.mubr.msk.bf16.vlgmr.msra.gmra.mxu0 %vm119_vm1, %v113_v1 }
  0x8d   : > { %684 = vmatprep.mubr.msk.bf16.mxu0 %vm762_vm0, %v761_v0 }
 0x14c   : > { %v160_v5 = vpop.f32.mrf.mxu0 }
 0x14d   : > { %v166_v6 = vsel %vm119_vm1, %v160_v5, -inf }
 0x14e   : > { %167 = vmax.xlane.f32.xlu0 %v166_v6  ;;  %v668_v7 = vpop.f32.mrf.mxu0 }
 0x150   : > { %v163_v8 = vpop.f32.mrf.mxu0 }
 0x152   : > { %v669_v9 = vpop.f32.mrf.mxu0 }
 0x164   : > { %449 = vrot.lane.b32.xlu0 %v809_v2, %s766_s15 }
 0x1d7   : > { %v168_v12 = vpop.xlane.xlu0 %167 }
 0x1d8   : > { %v169_v13 = vsub.f32 %v160_v5, %v168_v12 }
 0x1da   : > { %v170_v14 = vmul.f32 1.442695, %v169_v13 }
 0x1db   : > { %v450_v26 = vpop.permute.xlu0 %449 }
 0x1dc   : > { %737 = vpow2.f32 %v170_v14  ;;  %v455_v28 = vsel %vm119_vm1, %v450_v26, 0 }
 0x1e9   : > { %v738_v15 = vpop.eup %737 }
 0x1ea   : > { %v172_v16 = vsel %vm119_vm1, %v738_v15, 0.0 }
 0x1eb   : > { %173 = vadd.xlane.f32.xlu1 %v172_v16 }
 0x1fc   : > { %227 = vrot.lane.b32.xlu1 %v809_v2, %s767_s16 }
 0x200   : > { %339 = vrot.lane.b32.xlu1 %v809_v2, %s768_s17 }
 0x204   : > { %337 = vrot.lane.b32.xlu1 %v809_v2, %s769_s18 }
 0x208   : > { %447 = vrot.lane.b32.xlu1 %v809_v2, %s770_s19 }
 0x274   : > { %v174_v18 = vpop.xlane.xlu1 %173 }
 0x275   : > { %739 = vrcp.f32 %v174_v18 }
 0x278   : > { %v228_v21 = vpop.permute.xlu1 %227 }
 0x27c   : > { %v340_v24 = vpop.permute.xlu1 %339 }
 0x27d   : > { %v345_v25 = vsel %vm119_vm1, %v340_v24, 0 }
 0x280   : > { %v338_v27 = vpop.permute.xlu1 %337 }
 0x282   : > { %v740_v19 = vpop.eup %739 }
 0x283   : > { %v176_v20 = vmul.f32 %v740_v19, %v738_v15 }
 0x284   : > { %v448_v29 = vpop.permute.xlu1 %447 }
 0x285   : > { %v177_v22 = vpack.c.bf16 %v176_v20, %v176_v20 }
 0x287   : > { %673 = vmatmul.mubr.msk.bf16.vlgmr.msra.gmra.mxu1 %vm119_vm1, %v177_v22 }
 0x288   : > { %677 = vmatpush3.bf16.xpose.msra.mxu1 %v235_v23  ;;  %678 = vmatprep.mubr.msk.bf16.mxu1 %vm762_vm0, %v761_v0 }
 0x289   : > { %688 = vmatprep.subr.bf16.mxu1 %v761_v0 }
 0x28f   : > { %679 = vmatmul.mubr.msk.bf16.vlgmr.msra.gmra.mxu1 %vm119_vm1, %v228_v21 }
 0x290   : > { %689 = vmatpush3.bf16.xpose.msra.mxu1 %v345_v25  ;;  %690 = vmatprep.mubr.msk.bf16.mxu1 %vm762_vm0, %v761_v0 }
 0x291   : > { %700 = vmatprep.subr.bf16.mxu1 %v761_v0 }
 0x297   : > { %691 = vmatmul.mubr.msk.bf16.vlgmr.msra.gmra.mxu1 %vm119_vm1, %v338_v27 }
 0x298   : > { %701 = vmatpush3.bf16.xpose.msra.mxu1 %v455_v28  ;;  %702 = vmatprep.mubr.msk.bf16.mxu1 %vm762_vm0, %v761_v0 }
 0x29f   : > { %703 = vmatmul.mubr.msk.bf16.vlgmr.msra.gmra.mxu1 %vm119_vm1, %v448_v29 }
 0x347   : > { %v843_v30 = vpop.f32.mrf.mxu1 }
 0x349   : > { %v674_v31 = vpop.f32.mrf.mxu1 }
 0x34b   : > { %v224_v32 = vpop.f32.mrf.mxu1 }
 0x34d   : > { %v675_v33 = vpop.f32.mrf.mxu1 }
 0x34f   : > { %v271_v34 = vpop.f32.mrf.mxu1 }
 0x350   : > { %v277_v35 = vsel %vm119_vm1, %v271_v34, -inf }
 0x351   : > { %278 = vmax.xlane.f32.xlu1 %v277_v35  ;;  %v680_v36 = vpop.f32.mrf.mxu1 }
 0x353   : > { %v274_v37 = vpop.f32.mrf.mxu1 }
 0x355   : > { %v681_v38 = vpop.f32.mrf.mxu1 }
 0x357   : > { %v381_v39 = vpop.f32.mrf.mxu1 }
 0x358   : > { %v387_v40 = vsel %vm119_vm1, %v381_v39, -inf }
 0x359   : > { %388 = vmax.xlane.f32.xlu0 %v387_v40  ;;  %v692_v41 = vpop.f32.mrf.mxu1 }
 0x35b   : > { %v384_v42 = vpop.f32.mrf.mxu1 }
 0x35d   : > { %v693_v43 = vpop.f32.mrf.mxu1 }
 0x35f   : > { %v491_v44 = vpop.f32.mrf.mxu1 }
 0x360   : > { %v497_v45 = vsel %vm119_vm1, %v491_v44, -inf }
 0x361   : > { %498 = vmax.xlane.f32.xlu1 %v497_v45  ;;  %v704_v46 = vpop.f32.mrf.mxu1 }
 0x363   : > { %v494_v47 = vpop.f32.mrf.mxu1 }
 0x365   : > { %v705_v48 = vpop.f32.mrf.mxu1 }
 0x3da   : > { %v279_v49 = vpop.xlane.xlu1 %278 }
 0x3db   : > { %v280_v50 = vsub.f32 %v271_v34, %v279_v49 }
 0x3dd   : > { %v281_v51 = vmul.f32 1.442695, %v280_v50 }
 0x3df   : > { %741 = vpow2.f32 %v281_v51 }
 0x3e2   : > { %v389_v59 = vpop.xlane.xlu0 %388 }
 0x3e3   : > { %v390_v60 = vsub.f32 %v381_v39, %v389_v59 }
 0x3e5   : > { %v391_v61 = vmul.f32 1.442695, %v390_v60 }
 0x3ea   : > { %v499_v52 = vpop.xlane.xlu1 %498 }
 0x3eb   : > { %v500_v53 = vsub.f32 %v491_v44, %v499_v52 }
 0x3ec   : > { %v742_v54 = vpop.eup %741 }
 0x3ed   : > { %v501_v55 = vmul.f32 1.442695, %v500_v53  ;;  %v283_v56 = vsel %vm119_vm1, %v742_v54, 0.0 }
 0x3ee   : > { %284 = vadd.xlane.f32.xlu1 %v283_v56 }
 0x3ef   : > { %743 = vpow2.f32 %v501_v55 }
 0x3f0   : > { %745 = vpow2.f32 %v391_v61 }
 0x3fc   : > { %v744_v57 = vpop.eup %743 }
 0x3fd   : > { %v503_v58 = vsel %vm119_vm1, %v744_v57, 0.0  ;;  %v746_v62 = vpop.eup %745 }
 0x3fe   : > { %504 = vadd.xlane.f32.xlu0 %v503_v58  ;;  %v393_v63 = vsel %vm119_vm1, %v746_v62, 0.0 }
 0x3ff   : > { %289 = vrot.lane.b32.xlu1 %v809_v2, %s771_s20 }
 0x414   : > { %399 = vrot.lane.b32.xlu0 %v809_v2, %s772_s21 }
 0x423   : > { %394 = vadd.xlane.f32.xlu1 %v393_v63 }
 0x434   : > { %509 = vrot.lane.b32.xlu1 %v809_v2, %s773_s22 }
 0x477   : > { %v285_v1 = vpop.xlane.xlu1 %284 }
 0x478   : > { %747 = vrcp.f32 %v285_v1 }
 0x47b   : > { %v290_v3 = vpop.permute.xlu1 %289 }
 0x47c   : > { %v295_v4 = vsel %vm183_vm2, %v290_v3, 0 }
 0x47d   : > { %683 = vmatpush3.bf16.msra.mxu0 %v295_v4 }
 0x47e   : > { %694 = vmatprep.subr.bf16.mxu0 %v761_v0 }
 0x485   : > { %v748_v5 = vpop.eup %747 }
 0x486   : > { %v287_v6 = vmul.f32 %v748_v5, %v742_v54 }
 0x487   : > { %v505_v7 = vpop.xlane.xlu0 %504 }
 0x488   : > { %v288_v8 = vpack.c.bf16 %v287_v6, %v287_v6 }
 0x48a   : > { %685 = vmatmul.mubr.msk.bf16.vlgmr.msra.gmra.mxu0 %vm119_vm1, %v288_v8 }
 0x48b   : > { %v400_v9 = vpop.permute.xlu0 %399  ;;  %696 = vmatprep.mubr.msk.bf16.mxu0 %vm762_vm0, %v761_v0 }
 0x48c   : > { %v405_v2 = vsel %vm183_vm2, %v400_v9, 0 }
 0x48d   : > { %695 = vmatpush3.bf16.msra.mxu0 %v405_v2 }
 0x48e   : > { %706 = vmatprep.subr.bf16.mxu0 %v761_v0 }
 0x4ac   : > { %v395_v10 = vpop.xlane.xlu1 %394 }
 0x4ad   : > { %749 = vrcp.f32 %v395_v10 }
 0x4ae   : > { %751 = vrcp.f32 %v505_v7 }
 0x4b0   : > { %v510_v12 = vpop.permute.xlu1 %509 }
 0x4b1   : > { %v515_v14 = vsel %vm183_vm2, %v510_v12, 0 }
 0x4ba   : > { %v750_v11 = vpop.eup %749 }
 0x4bb   : > { %v397_v13 = vmul.f32 %v750_v11, %v746_v62  ;;  %v752_v16 = vpop.eup %751 }
 0x4bc   : > { %v507_v17 = vmul.f32 %v752_v16, %v744_v57 }
 0x4bd   : > { %v398_v15 = vpack.c.bf16 %v397_v13, %v397_v13 }
 0x4be   : > { %v508_v18 = vpack.c.bf16 %v507_v17, %v507_v17 }
 0x4bf   : > { %697 = vmatmul.mubr.msk.bf16.vlgmr.msra.gmra.mxu0 %vm119_vm1, %v398_v15 }
 0x4c0   : > { %707 = vmatpush3.bf16.msra.mxu0 %v515_v14  ;;  %708 = vmatprep.mubr.msk.bf16.mxu0 %vm762_vm0, %v761_v0 }
 0x4c7   : > { %709 = vmatmul.mubr.msk.bf16.vlgmr.msra.gmra.mxu0 %vm119_vm1, %v508_v18 }
 0x54a   : > { %v331_v19 = vpop.f32.mrf.mxu0 }
 0x54b   : > { %558 = vrot.lane.b32.xlu1 %v331_v19, %s774_s23 }
 0x54c   : > { %v686_v20 = vpop.f32.mrf.mxu0 }
 0x54e   : > { %v334_v21 = vpop.f32.mrf.mxu0 }
 0x550   : > { %v687_v22 = vpop.f32.mrf.mxu0 }
 0x57f   : > { %v441_v23 = vpop.f32.mrf.mxu0 }
 0x580   : > { %562 = vrot.lane.b32.xlu0 %v441_v23, %s775_s24 }
 0x581   : > { %v698_v24 = vpop.f32.mrf.mxu0 }
 0x583   : > { %v444_v25 = vpop.f32.mrf.mxu0 }
 0x585   : > { %v699_v26 = vpop.f32.mrf.mxu0 }
 0x587   : > { %v551_v27 = vpop.f32.mrf.mxu0 }
 0x588   : > { %566 = vrot.lane.b32.xlu1 %v551_v27, %s776_s25 }
 0x589   : > { %v710_v0 = vpop.f32.mrf.mxu0 }
 0x58b   : > { %v554_v28 = vpop.f32.mrf.mxu0 }
 0x58d   : > { %v711_v29 = vpop.f32.mrf.mxu0 }
 0x5bd   : > { %v559_v31 = vpop.permute.xlu1 %558 }
 0x5be   : > { %v569_v33 = vsel %vm119_vm1, %v843_v30, %v559_v31 }
 0x5f2   : > { %v563_v32 = vpop.permute.xlu0 %562 }
 0x5f3   : > { %v571_v34 = vsel %vm570_vm3, %v569_v33, %v563_v32 }
 0x5fa   : > { %v567_v35 = vpop.permute.xlu1 %566 }
 0x5fb   : > { %v573_v36 = vsel %vm572_vm4, %v571_v34, %v567_v35 }
 0x5fc   : > { %v574_v37 = vpack.c.bf16 %v573_v36, %v573_v36 }
 0x5fe   : > { %576 = vst.msk [vmem:[%s111_s28] sm:$0xf] %vm575_vm5, %v574_v37 }
 0x5ff PF: > { %s11_s6 = sadd.s32 1, %s759_s6  }
 0x600   : > { %p8_p4 = scmp.ge.s32.totalorder %s11_s6, 4  }
 0x602   :  { %10 = sbr.rel (!%p8_p4) target bundleno = 1 (0x1), region = 54 }

// kernel: transformer_forward.11
= control target key start
LH: loop header
LB: loop body
LE: loop exit
PB: predicated region body
PF: predicated region fallthrough
CT: control target
= control target key end

     0   :  { %vm19_vm0 = vcmask 785408   ;;  %v151_v0 = vmov 0.0   ;;  %vm152_vm1 = vmmov 0   ;;  %vm47_vm2 = vcmask 261120   ;;  %s195_s1 = inlined_call_operand.vmem [shape: bf16[32,96], index: 1, kind: input, shape index: {}]   ;;  %s196_s0 = inlined_call_operand.vmem [shape: bf16[16,32], index: 0, kind: input, shape index: {}]   ;;  %s197_s2 = inlined_call_operand.vmem [shape: f32[1,96], index: 2, kind: input, shape index: {}]   ;;  %s198_s3 = inlined_call_operand.vmem [shape: bf16[16,96], index: 3, kind: output, shape index: {}]  }
   0x1   :  { %138 = vmatprep.subr.bf16.mxu0 %v151_v0  ;;  %v148_v1 = vld [vmem:[%s195_s1 + $0x8] sm:$0xff]   ;;  %142 = vmatprep.mubr.msk.bf16.mxu0 %vm152_vm1, %v151_v0  ;;  %20 = vst.msk [vmem:[#allocation2] sm:$0xff] %vm19_vm0, %v151_v0  ;;  %21 = vst.msk [vmem:[#allocation2 + $0x8] sm:$0xff] %vm19_vm0, %v151_v0  ;;  %v149_v2 = vld [vmem:[%s195_s1] sm:$0xff]   ;;  %vm119_vm3 = vcmask 781312  }
   0x2   :  { %139 = vmatpush3.bf16.msra.mxu0 %v148_v1  ;;  %v150_v3 = vld [vmem:[%s196_s0] sm:$0xff]  }
   0x3   :  { %140 = vmatprep.subr.bf16.mxu0 %v151_v0  ;;  %v130_v12 = vld [vmem:[%s197_s2] ss:$0 sm:$0xff] }
   0x6   :  { %141 = vmatpush3.bf16.msra.mxu0 %v149_v2 }
   0x8   :  { %v22_v4 = vld [vmem:[#allocation2] sm:$0xff]  ;;  %v23_v8 = vld [vmem:[#allocation2 + $0x8] sm:$0xff] }
   0x9   :  { %143 = vmatmul.mubr.msk.bf16.vlgmr.msra.gmra.mxu0 %vm47_vm2, %v150_v3 }
  0xc9   :  { %v85_v5 = vpop.f32.mrf.mxu0 }
  0xca   :  { %v92_v6 = vadd.f32 %v85_v5, %v22_v4 }
  0xcb   :  { %v144_v7 = vpop.f32.mrf.mxu0 }
  0xcc   :  { %95 = vst.msk [vmem:[#allocation2] sm:$0xff] %vm19_vm0, %v92_v6 }
  0xcd   :  { %v88_v9 = vpop.f32.mrf.mxu0 }
  0xce   :  { %v93_v10 = vadd.f32 %v88_v9, %v23_v8 }
  0xcf   :  { %v145_v11 = vpop.f32.mrf.mxu0 }
  0xd0   :  { %96 = vst.msk [vmem:[#allocation2 + $0x8] sm:$0xff] %vm19_vm0, %v93_v10 }
  0xd3   :  { %v100_v13 = vld [vmem:[#allocation2] sm:$0xff] }
  0xd4   :  { %v109_v14 = vadd.f32 %v130_v12, %v100_v13 }
  0xd6   :  { %v133_v15 = vpack.c.bf16 %v109_v14, %v109_v14 }
  0xd7   :  { %v101_v16 = vld [vmem:[#allocation2 + $0x8] sm:$0xff] }
  0xd8   :  { %120 = vst.msk [vmem:[%s198_s3] sm:$0xf] %vm119_vm3, %v133_v15  ;;  %v110_v17 = vadd.f32 %v130_v12, %v101_v16 }
  0xda   :  { %v134_v18 = vpack.c.bf16 %v110_v17, %v110_v17 }
  0xdc   :  { %121 = vst.msk [vmem:[%s198_s3 + $0x4] sm:$0xf] %vm119_vm3, %v134_v18 }

// kernel: transformer_forward.13
= control target key start
LH: loop header
LB: loop body
LE: loop exit
PB: predicated region body
PF: predicated region fallthrough
CT: control target
= control target key end

     0   :  { %vm28_vm0 = vcmask 261120   ;;  %v220_v0 = vmov 0.0   ;;  %vm221_vm1 = vmmov 0   ;;  %vm178_vm2 = vcmask 257024   ;;  %s293_s1 = inlined_call_operand.vmem [shape: bf16[32,32], index: 1, kind: input, shape index: {}]   ;;  %s294_s0 = inlined_call_operand.vmem [shape: bf16[16,32], index: 0, kind: input, shape index: {}]   ;;  %s295_s3 = inlined_call_operand.vmem [shape: bf16[16,32], index: 3, kind: input, shape index: {}]   ;;  %s296_s2 = inlined_call_operand.vmem [shape: f32[1,32], index: 2, kind: input, shape index: {}]   ;;  %s297_s4 = inlined_call_operand.vmem [shape: f32[1,32], index: 4, kind: input, shape index: {}]   ;;  %s298_s5 = inlined_call_operand.vmem [shape: f32[1,32], index: 5, kind: input, shape index: {}]   ;;  %s299_s6 = inlined_call_operand.vmem [shape: bf16[16,32], index: 6, kind: output, shape index: {}]  }
   0x1   :  { %203 = vmatprep.subr.bf16.mxu0 %v220_v0  ;;  %v213_v1 = vld [vmem:[%s293_s1 + $0x8] sm:$0xff]   ;;  %207 = vmatprep.mubr.msk.bf16.mxu0 %vm221_vm1, %v220_v0  ;;  %29 = vst.msk [vmem:[#allocation2] sm:$0xff] %vm28_vm0, %v220_v0  ;;  %30 = vst.msk [vmem:[#allocation2 + $0x8] sm:$0xff] %vm28_vm0, %v220_v0  ;;  %v214_v2 = vld [vmem:[%s293_s1] sm:$0xff]  }
   0x2   :  { %204 = vmatpush3.bf16.msra.mxu0 %v213_v1  ;;  %v215_v3 = vld [vmem:[%s294_s0] sm:$0xff]  }
   0x3   :  { %205 = vmatprep.subr.bf16.mxu0 %v220_v0  ;;  %v197_v12 = vld [vmem:[%s295_s3] sm:$0xff]  }
   0x4   :  { %v189_v13 = vld [vmem:[%s296_s2] ss:$0 sm:$0xff]  ;;  %v198_v14 = vunpack.c.l.bf16 %v197_v12  ;;  %v199_v18 = vunpack.c.h.bf16 %v197_v12 }
   0x5   :  { %v190_v41 = vld [vmem:[%s297_s4] ss:$0 sm:$0xff] }
   0x6   :  { %206 = vmatpush3.bf16.msra.mxu0 %v214_v2  ;;  %v191_v43 = vld [vmem:[%s298_s5] ss:$0 sm:$0xff] }
   0x8   :  { %v31_v4 = vld [vmem:[#allocation2] sm:$0xff]  ;;  %v32_v8 = vld [vmem:[#allocation2 + $0x8] sm:$0xff] }
   0x9   :  { %208 = vmatmul.mubr.msk.bf16.vlgmr.msra.gmra.mxu0 %vm28_vm0, %v215_v3 }
  0xc9   :  { %v94_v5 = vpop.f32.mrf.mxu0 }
  0xca   :  { %v101_v6 = vadd.f32 %v94_v5, %v31_v4 }
  0xcb   :  { %v209_v7 = vpop.f32.mrf.mxu0 }
  0xcc   :  { %103 = vst.msk [vmem:[#allocation2] sm:$0xff] %vm28_vm0, %v101_v6 }
  0xcd   :  { %v97_v9 = vpop.f32.mrf.mxu0 }
  0xce   :  { %v102_v10 = vadd.f32 %v97_v9, %v32_v8 }
  0xcf   :  { %v210_v11 = vpop.f32.mrf.mxu0 }
  0xd0   :  { %104 = vst.msk [vmem:[#allocation2 + $0x8] sm:$0xff] %vm28_vm0, %v102_v10 }
  0xd3   :  { %v108_v15 = vld [vmem:[#allocation2] sm:$0xff] }
  0xd4   :  { %v117_v16 = vadd.f32 %v189_v13, %v108_v15 }
  0xd6   :  { %v123_v17 = vadd.f32 %v198_v14, %v117_v16 }
  0xd7   :  { %v109_v19 = vld [vmem:[#allocation2 + $0x8] sm:$0xff] }
  0xd8   :  { %v125_v20 = vsel %vm28_vm0, %v123_v17, 0.0  ;;  %v118_v21 = vadd.f32 %v189_v13, %v109_v19 }
  0xd9   :  { %126 = vadd.xlane.f32.xlu0 %v125_v20 }
  0xda   :  { %v124_v22 = vadd.f32 %v199_v18, %v118_v21 }
  0xdc   :  { %v128_v23 = vsel %vm28_vm0, %v124_v22, 0.0 }
  0xdd   :  { %129 = vadd.xlane.f32.xlu0 %v128_v23 }
 0x162   :  { %v127_v24 = vpop.xlane.xlu0 %126 }
 0x163   :  { %v132_v25 = vmul.f32 0.03125, %v127_v24 }
 0x165   :  { %v134_v26 = vsub.f32 %v123_v17, %v132_v25 }
 0x166   :  { %v130_v27 = vpop.xlane.xlu0 %129 }
 0x167   :  { %v133_v28 = vmul.f32 0.03125, %v130_v27  ;;  %v136_v29 = vmul.f32 %v134_v26, %v134_v26 }
 0x169   :  { %v135_v30 = vsub.f32 %v124_v22, %v133_v28  ;;  %v138_v31 = vsel %vm28_vm0, %v136_v29, 0.0 }
 0x16a   :  { %139 = vadd.xlane.f32.xlu1 %v138_v31 }
 0x16b   :  { %v137_v32 = vmul.f32 %v135_v30, %v135_v30 }
 0x16d   :  { %v141_v33 = vsel %vm28_vm0, %v137_v32, 0.0 }
 0x16e   :  { %142 = vadd.xlane.f32.xlu1 %v141_v33 }
 0x1f3   :  { %v140_v34 = vpop.xlane.xlu1 %139 }
 0x1f4   :  { %v144_v35 = vmul.f32 0.03125, %v140_v34 }
 0x1f6   :  { %v146_v36 = vadd.f32 1e-05, %v144_v35 }
 0x1f7   :  { %v143_v37 = vpop.xlane.xlu1 %142 }
 0x1f8   :  { %216 = vrsqrt.f32 %v146_v36  ;;  %v145_v38 = vmul.f32 0.03125, %v143_v37 }
 0x1fa   :  { %v147_v39 = vadd.f32 1e-05, %v145_v38 }
 0x1fc   :  { %218 = vrsqrt.f32 %v147_v39 }
 0x205   :  { %v217_v40 = vpop.eup %216 }
 0x206   :  { %v150_v42 = vmul.f32 %v217_v40, %v134_v26 }
 0x208   :  { %v159_v44 = vmul.f32 %v190_v41, %v150_v42 }
 0x209   :  { %v219_v45 = vpop.eup %218 }
 0x20a   :  { %v168_v46 = vadd.f32 %v191_v43, %v159_v44  ;;  %v151_v47 = vmul.f32 %v219_v45, %v135_v30 }
 0x20c   :  { %v194_v48 = vpack.c.bf16 %v168_v46, %v168_v46  ;;  %v160_v49 = vmul.f32 %v190_v41, %v151_v47 }
 0x20e   :  { %179 = vst.msk [vmem:[%s299_s6] sm:$0xf] %vm178_vm2, %v194_v48  ;;  %v169_v50 = vadd.f32 %v191_v43, %v160_v49 }
 0x210   :  { %v195_v51 = vpack.c.bf16 %v169_v50, %v169_v50 }
 0x212   :  { %180 = vst.msk [vmem:[%s299_s6 + $0x4] sm:$0xf] %vm178_vm2, %v195_v51 }

// kernel: transformer_forward.14
= control target key start
LH: loop header
LB: loop body
LE: loop exit
PB: predicated region body
PF: predicated region fallthrough
CT: control target
= control target key end

     0   :  { %v293_v0 = vmov 0.0   ;;  %vm294_vm0 = vmmov 0   ;;  %vm60_vm1 = vcmask 261120   ;;  %vm234_vm2 = vcmask 257024   ;;  %s382_s1 = inlined_call_operand.vmem [shape: bf16[32,32], index: 1, kind: input, shape index: {}]   ;;  %s383_s0 = inlined_call_operand.vmem [shape: bf16[16,32], index: 0, kind: input, shape index: {}, may-alias: {0,5}]   ;;  %s384_s3 = inlined_call_operand.vmem [shape: bf16[32,32], index: 3, kind: input, shape index: {}]   ;;  %s385_s2 = inlined_call_operand.vmem [shape: f32[1,32], index: 2, kind: input, shape index: {}]   ;;  %s386_s5 = inlined_call_operand.vmem [shape: bf16[16,32], index: 5, kind: input, shape index: {}, may-alias: {0,5}]   ;;  %s387_s4 = inlined_call_operand.vmem [shape: f32[1,32], index: 4, kind: input, shape index: {}]   ;;  %s388_s6 = inlined_call_operand.vmem [shape: f32[1,32], index: 6, kind: input, shape index: {}]   ;;  %s389_s7 = inlined_call_operand.vmem [shape: f32[1,32], index: 7, kind: input, shape index: {}]   ;;  %s390_s8 = inlined_call_operand.vmem [shape: bf16[16,32], index: 8, kind: output, shape index: {}]  }
   0x1   :  { %266 = vmatprep.subr.bf16.mxu0 %v293_v0  ;;  %v284_v1 = vld [vmem:[%s382_s1 + $0x8] sm:$0xff]   ;;  %270 = vmatprep.mubr.msk.bf16.mxu0 %vm294_vm0, %v293_v0  ;;  %v285_v2 = vld [vmem:[%s382_s1] sm:$0xff]  }
   0x2   :  { %274 = vmatprep.subr.bf16.mxu1 %v293_v0  ;;  %278 = vmatprep.mubr.msk.bf16.mxu1 %vm294_vm0, %v293_v0  ;;  %v286_v3 = vld [vmem:[%s383_s0] sm:$0xff]   ;;  %v287_v4 = vld [vmem:[%s384_s3 + $0x8] sm:$0xff]  }
   0x3   :  { %267 = vmatpush3.bf16.msra.mxu0 %v284_v1  ;;  %275 = vmatpush3.bf16.msra.mxu1 %v287_v4  ;;  %v288_v5 = vld [vmem:[%s384_s3] sm:$0xff]  }
   0x4   :  { %268 = vmatprep.subr.bf16.mxu0 %v293_v0  ;;  %276 = vmatprep.subr.bf16.mxu1 %v293_v0  ;;  %v241_v6 = vld [vmem:[%s385_s2] ss:$0 sm:$0xff] }
   0x5   :  { %v257_v16 = vld [vmem:[%s386_s5] sm:$0xff]  }
   0x6   :  { %v246_v17 = vld [vmem:[%s387_s4] ss:$0 sm:$0xff]  ;;  %v258_v18 = vunpack.c.l.bf16 %v257_v16  ;;  %v259_v23 = vunpack.c.h.bf16 %v257_v16 }
   0x7   :  { %269 = vmatpush3.bf16.msra.mxu0 %v285_v2  ;;  %277 = vmatpush3.bf16.msra.mxu1 %v288_v5  ;;  %v250_v47 = vld [vmem:[%s388_s6] ss:$0 sm:$0xff] }
   0x8   :  { %v251_v49 = vld [vmem:[%s389_s7] ss:$0 sm:$0xff] }
   0xa   :  { %271 = vmatmul.mubr.msk.bf16.vlgmr.msra.gmra.mxu0 %vm60_vm1, %v286_v3 }
  0xca   :  { %v98_v7 = vpop.f32.mrf.mxu0 }
  0xcb   :  { %v99_v9 = vadd.f32 %v241_v6, %v98_v7 }
  0xcc   :  { %v272_v8 = vpop.f32.mrf.mxu0 }
  0xcd   :  { %v105_v13 = vmax.f32 %v99_v9, 0.0 }
  0xce   :  { %v101_v10 = vpop.f32.mrf.mxu0 }
  0xcf   :  { %v102_v11 = vadd.f32 %v241_v6, %v101_v10 }
  0xd0   :  { %v273_v12 = vpop.f32.mrf.mxu0 }
  0xd1   :  { %v106_v14 = vmax.f32 %v102_v11, 0.0 }
  0xd3   :  { %v107_v15 = vpack.c.bf16 %v106_v14, %v105_v13 }
  0xd5   :  { %279 = vmatmul.mubr.msk.bf16.vlgmr.msra.gmra.mxu1 %vm60_vm1, %v107_v15 }
 0x195   :  { %v168_v19 = vpop.f32.mrf.mxu1 }
 0x196   :  { %v169_v20 = vadd.f32 %v246_v17, %v168_v19 }
 0x197   :  { %v280_v21 = vpop.f32.mrf.mxu1 }
 0x198   :  { %v179_v22 = vadd.f32 %v258_v18, %v169_v20 }
 0x199   :  { %v171_v24 = vpop.f32.mrf.mxu1 }
 0x19a   :  { %v172_v25 = vadd.f32 %v246_v17, %v171_v24  ;;  %v181_v26 = vsel %vm60_vm1, %v179_v22, 0.0 }
 0x19b   :  { %182 = vadd.xlane.f32.xlu0 %v181_v26  ;;  %v281_v27 = vpop.f32.mrf.mxu1 }
 0x19c   :  { %v180_v28 = vadd.f32 %v259_v23, %v172_v25 }
 0x19e   :  { %v184_v29 = vsel %vm60_vm1, %v180_v28, 0.0 }
 0x19f   :  { %185 = vadd.xlane.f32.xlu0 %v184_v29 }
 0x224   :  { %v183_v30 = vpop.xlane.xlu0 %182 }
 0x225   :  { %v188_v31 = vmul.f32 0.03125, %v183_v30 }
 0x227   :  { %v190_v32 = vsub.f32 %v179_v22, %v188_v31 }
 0x228   :  { %v186_v33 = vpop.xlane.xlu0 %185 }
 0x229   :  { %v189_v34 = vmul.f32 0.03125, %v186_v33  ;;  %v192_v35 = vmul.f32 %v190_v32, %v190_v32 }
 0x22b   :  { %v191_v36 = vsub.f32 %v180_v28, %v189_v34  ;;  %v194_v37 = vsel %vm60_vm1, %v192_v35, 0.0 }
 0x22c   :  { %195 = vadd.xlane.f32.xlu1 %v194_v37 }
 0x22d   :  { %v193_v38 = vmul.f32 %v191_v36, %v191_v36 }
 0x22f   :  { %v197_v39 = vsel %vm60_vm1, %v193_v38, 0.0 }
 0x230   :  { %198 = vadd.xlane.f32.xlu1 %v197_v39 }
 0x2b5   :  { %v196_v40 = vpop.xlane.xlu1 %195 }
 0x2b6   :  { %v200_v41 = vmul.f32 0.03125, %v196_v40 }
 0x2b8   :  { %v202_v42 = vadd.f32 1e-05, %v200_v41 }
 0x2b9   :  { %v199_v43 = vpop.xlane.xlu1 %198 }
 0x2ba   :  { %289 = vrsqrt.f32 %v202_v42  ;;  %v201_v44 = vmul.f32 0.03125, %v199_v43 }
 0x2bc   :  { %v203_v45 = vadd.f32 1e-05, %v201_v44 }
 0x2be   :  { %291 = vrsqrt.f32 %v203_v45 }
 0x2c7   :  { %v290_v46 = vpop.eup %289 }
 0x2c8   :  { %v206_v48 = vmul.f32 %v290_v46, %v190_v32 }
 0x2ca   :  { %v215_v50 = vmul.f32 %v250_v47, %v206_v48 }
 0x2cb   :  { %v292_v51 = vpop.eup %291 }
 0x2cc   :  { %v224_v52 = vadd.f32 %v251_v49, %v215_v50  ;;  %v207_v53 = vmul.f32 %v292_v51, %v191_v36 }
 0x2ce   :  { %v254_v54 = vpack.c.bf16 %v224_v52, %v224_v52  ;;  %v216_v55 = vmul.f32 %v250_v47, %v207_v53 }
 0x2d0   :  { %235 = vst.msk [vmem:[%s390_s8] sm:$0xf] %vm234_vm2, %v254_v54  ;;  %v225_v56 = vadd.f32 %v251_v49, %v216_v55 }
 0x2d2   :  { %v255_v57 = vpack.c.bf16 %v225_v56, %v225_v56 }
 0x2d4   :  { %236 = vst.msk [vmem:[%s390_s8 + $0x4] sm:$0xf] %vm234_vm2, %v255_v57 }

// kernel: transformer_forward.19
= control target key start
LH: loop header
LB: loop body
LE: loop exit
PB: predicated region body
PF: predicated region fallthrough
CT: control target
= control target key end

     0   :  { %vm13_vm0 = vcmask 254976   ;;  %vm20_vm1 = vcmask 261120   ;;  %v87_v1 = vmov 0.0   ;;  %s107_s0 = inlined_call_operand.vmem [shape: bf16[2,8,32], index: 0, kind: input, shape index: {}]   ;;  %s108_s1 = inlined_call_operand.hbm [shape: f32[2,32], index: 1, kind: output, shape index: {}]  }
   0x1   :  { %v60_v0 = vld [vmem:[%s107_s0] sm:$0xff]   ;;  %14 = vst.msk [vmem:[#allocation2] sm:$0x3] %vm13_vm0, %v87_v1 }
   0x2   :  { %v61_v2 = vunpack.c.l.bf16 %v60_v0  ;;  %v62_v3 = vunpack.c.h.bf16 %v60_v0 }
   0x3   :  { %6 = vsyncpa [#allocation3], 0  ;;  %vm39_vm2 = vcmask 1041409   ;;  %s88_s0 = smov [#allocation2]  }
   0x4   :  { %v21_v4 = vsel %vm20_vm1, %v61_v2, 0.0  ;;  %v28_v5 = vsel %vm20_vm1, %v62_v3, 0.0  ;;  %s51_s8 = sshll.u32 %s88_s0, 4  ;;  %s52_s8 = int_to_ptr.vmem [resolvable:$true] %s51_s8 }
   0x5   :  { %v22_v6 = vrot.slane %v21_v4, 4  ;;  %v29_v7 = vrot.slane %v28_v5, 4  ;;  %s65_s9 = scalar_lea.vmem %s52_s8, 32  ;;  %p70_p1 = scmp.lt.s32.totalorder %s52_s8, %s52_s8 }
   0x6   :  { %p66_p0 = scmp.ne.s32.totalorder %s52_s8, %s65_s9  ;;  %p71_p2 = scmp.lt.s32.totalorder %s65_s9, %s65_s9 }
   0x7   :  { %v23_v8 = vadd.f32 %v22_v6, %v21_v4  ;;  %v30_v9 = vadd.f32 %v29_v7, %v28_v5 }
   0x8   :  { %v15_v18 = vld [vmem:[#allocation2] sm:$0x3]  ;;  %p72_p3 = por %p71_p2, %p70_p1 }
   0x9   :  { %v24_v10 = vrot.slane %v23_v8, 2  ;;  %v31_v11 = vrot.slane %v30_v9, 2 }
   0xa   :  { %p73_p4 = pnand %p72_p3, %p66_p0 }
   0xb   :  { %v25_v12 = vadd.f32 %v24_v10, %v23_v8  ;;  %v32_v13 = vadd.f32 %v31_v11, %v30_v9 }
   0xd   :  { %v26_v14 = vrot.slane %v25_v12, 1  ;;  %v33_v15 = vrot.slane %v32_v13, 1 }
   0xf   :  { %v27_v16 = vadd.f32 %v26_v14, %v25_v12  ;;  %v34_v17 = vadd.f32 %v33_v15, %v32_v13 }
  0x11   :  { %v35_v19 = vmul.f32 0.125, %v27_v16  ;;  %v36_v20 = vmul.f32 0.125, %v34_v17 }
  0x13   :  { %v40_v21 = vsel %vm39_vm2, %v36_v20, %v35_v19 }
  0x14   :  { %v42_v22 = vadd.f32 %v40_v21, %v15_v18 }
  0x16   :  { %44 = vst.msk [vmem:[#allocation2] sm:$0x3] %vm13_vm0, %v42_v22 }
  0x17   :  { %76 = shalt.err (!%p73_p4)
}
  0x18   :  { %54 = dma.vmem_to_hbm [thread:$0]  %s52_s8, 32, %s108_s1, [#allocation3]  }
  0x19   :  { %85 = dma.done.wait [#allocation3], 32  }
  0x1a   :  { %86 = vsyncadd [#allocation3], 4294967264 }
  0x1b   :  { %58 = vsyncpa [#allocation3], 1 }

</bundles_post_ra>
